<compile_context>
chip_gen: v7x
topology: tpu7x:2x2x1
jax: 0.10.0
libtpu: 0.0.40
codegen_flags: <defaults>
</compile_context>

<pallas_src>
import functools
from functools import partial

import jax
import jax.numpy as jnp
import numpy as np
from jax import lax
from jax.experimental import pallas as pl
from jax.experimental.pallas import tpu as pltpu

LANE = 128


def _round_up(x, m):
    return ((x + m - 1) // m) * m


# ----------------------------------------------------------------------------
# Pallas kernels
# ----------------------------------------------------------------------------
def _pw_conv_bn_kernel(x_ref, w_ref, b_ref, o_ref, *, relu):
    # x_ref: (bn, Cin_p)  w_ref: (Cin_p, Cout_p)  b_ref: (1, Cout_p) f32
    # BN scale is pre-folded into w_ref, so the kernel is dot + bias (+ReLU).
    y = jnp.dot(x_ref[...], w_ref[...], preferred_element_type=jnp.float32)
    y = y + b_ref[...]
    if relu:
        y = jnp.maximum(y, 0.0)
    o_ref[...] = y.astype(o_ref.dtype)


def _dw_conv_bn_kernel(x_ref, w_ref, b_ref, o_ref, xp_ref, *, stride):
    # x_ref : (1, H, W, C)      unpadded activation block (one batch element)
    # w_ref : (9, C) f32        BN-scale-folded depthwise taps
    # b_ref : (1, C) f32        BN bias
    # o_ref : (1, Ho, Wo, C)    stride-s output block (strided directly in-kernel)
    # xp_ref: (1, H+2, W+2, C)  VMEM scratch holding the zero-padded halo
    _, h, w, c = x_ref.shape
    _, ho, wo, _ = o_ref.shape

    # Build the zero-padded halo in VMEM (replaces an HBM round trip via jnp.pad).
    xp_ref[...] = jnp.zeros_like(xp_ref)
    xp_ref[:, pl.ds(1, h), pl.ds(1, w), :] = x_ref[...]

    taps = w_ref[...]  # (9, C) read once, taps sliced from the value below
    acc = jnp.zeros((1, ho, wo, c), jnp.float32)
    for kh in range(3):
        for kw in range(3):
            if stride == 1:
                win = xp_ref[:, pl.ds(kh, ho), pl.ds(kw, wo), :]
            else:
                # Strided window read: only the kept output positions are loaded/computed.
                win = xp_ref[:, pl.ds(kh, ho, stride=stride),
                             pl.ds(kw, wo, stride=stride), :]
            tap = taps[kh * 3 + kw:kh * 3 + kw + 1, :]  # (1, C), lane broadcast
            acc = acc + win.astype(jnp.float32) * tap
    o_ref[...] = (acc + b_ref[...]).astype(o_ref.dtype)


# ----------------------------------------------------------------------------
# Kernel wrappers (Pallas path)
# ----------------------------------------------------------------------------
def _pick_row_tile(n, cin_p, cout_p, itemsize):
    """Row tile for the 1x1 conv: big enough to amortize grid overhead, bounded so
    double-buffered in/out tiles stay well inside even v7x's 64 MiB VMEM."""
    if n <= 8:
        return n
    budget = 8 * 1024 * 1024  # conservative across v5e/v6e/v7x
    per_row = 2 * (cin_p + cout_p) * itemsize  # double-buffered input + output
    cap = max(8, budget // per_row)
    bn = min(n, cap, 1024)
    return max(8, (bn // 8) * 8)


def pw_conv_bn(x, wmat, scale, bias, relu, compute_dtype):
    """1x1 conv + folded BN (+ReLU) on lane-padded NHWC input via a tiled matmul."""
    b, h, w_sp, cin_p = x.shape
    cin, cout = wmat.shape
    cout_p = _round_up(cout, LANE)

    # Fold BN scale into the weights; zero-pad to lane-dense shapes.
    wf = wmat * scale[None, :]
    wf = jnp.pad(wf, ((0, cin_p - cin), (0, cout_p - cout))).astype(compute_dtype)
    bf = jnp.pad(bias, (0, cout_p - cout)).astype(jnp.float32).reshape(1, cout_p)

    n = b * h * w_sp
    xf = x.reshape(n, cin_p)
    bn = _pick_row_tile(n, cin_p, cout_p, jnp.dtype(compute_dtype).itemsize)

    out = pl.pallas_call(
        functools.partial(_pw_conv_bn_kernel, relu=relu),
        out_shape=jax.ShapeDtypeStruct((n, cout_p), compute_dtype),
        grid_spec=pltpu.PrefetchScalarGridSpec(
            num_scalar_prefetch=0,
            grid=(pl.cdiv(n, bn),),
            in_specs=[
                pl.BlockSpec((bn, cin_p), lambda i: (i, 0)),
                pl.BlockSpec((cin_p, cout_p), lambda i: (0, 0)),
                pl.BlockSpec((1, cout_p), lambda i: (0, 0)),
            ],
            out_specs=pl.BlockSpec((bn, cout_p), lambda i: (i, 0)),
        ),
        compiler_params=pltpu.CompilerParams(dimension_semantics=("parallel",)),
    )(xf, wf, bf)
    return out.reshape(b, h, w_sp, cout_p)


def dw_conv_bn(x, wdw, scale, bias, stride, compute_dtype):
    """3x3 depthwise conv (padding=1, stride) + folded BN on lane-padded NHWC input."""
    b, h, w_sp, c_p = x.shape
    c = wdw.shape[-1]
    ho = (h - 1) // stride + 1
    wo = (w_sp - 1) // stride + 1

    wf = wdw.reshape(9, c) * scale[None, :]                     # fold BN scale
    wf = jnp.pad(wf, ((0, 0), (0, c_p - c))).astype(jnp.float32)
    bf = jnp.pad(bias, (0, c_p - c)).astype(jnp.float32).reshape(1, c_p)

    out = pl.pallas_call(
        functools.partial(_dw_conv_bn_kernel, stride=stride),
        out_shape=jax.ShapeDtypeStruct((b, ho, wo, c_p), compute_dtype),
        grid_spec=pltpu.PrefetchScalarGridSpec(
            num_scalar_prefetch=0,
            grid=(b,),
            in_specs=[
                pl.BlockSpec((1, h, w_sp, c_p), lambda i: (i, 0, 0, 0)),
                pl.BlockSpec((9, c_p), lambda i: (0, 0)),
                pl.BlockSpec((1, c_p), lambda i: (0, 0)),
            ],
            out_specs=pl.BlockSpec((1, ho, wo, c_p), lambda i: (i, 0, 0, 0)),
            scratch_shapes=[pltpu.VMEM((1, h + 2, w_sp + 2, c_p), compute_dtype)],
        ),
        compiler_params=pltpu.CompilerParams(dimension_semantics=("parallel",)),
    )(x, wf, bf)
    return out


# ----------------------------------------------------------------------------
# Module forward (Pallas path)
# ----------------------------------------------------------------------------
def _channel_shuffle_nhwc(x, groups):
    b, h, w, c = x.shape
    x = x.reshape(b, h, w, groups, c // groups)
    x = jnp.swapaxes(x, 3, 4)
    return x.reshape(b, h, w, c)


def _pad_channels(x, cp):
    c = x.shape[-1]
    if cp == c:
        return x
    return jnp.pad(x, ((0, 0), (0, 0), (0, 0), (0, cp - c)))


def _branch1(x_p, p, stride, compute_dtype):
    y = dw_conv_bn(x_p, p["dw_w"], p["bn1_s"], p["bn1_b"], stride, compute_dtype)
    y = pw_conv_bn(y, p["pw_w"], p["bn2_s"], p["bn2_b"], True, compute_dtype)
    return y


def _branch2(x_p, p, stride, compute_dtype):
    y = pw_conv_bn(x_p, p["pw1_w"], p["bn1_s"], p["bn1_b"], True, compute_dtype)
    y = dw_conv_bn(y, p["dw_w"], p["bn2_s"], p["bn2_b"], stride, compute_dtype)
    y = pw_conv_bn(y, p["pw2_w"], p["bn3_s"], p["bn3_b"], True, compute_dtype)
    return y


@partial(jax.jit, static_argnames=("stride", "compute_dtype"))
def inverted_residual(x_nchw, params, *, stride, compute_dtype=jnp.bfloat16):
    x = jnp.transpose(x_nchw, (0, 2, 3, 1))  # NCHW -> NHWC (glue)
    cout = params["b2"]["pw2_w"].shape[1]

    if stride == 1:
        split = x.shape[-1] // 2
        x1 = x[..., :split]                                   # passthrough half (exact)
        x2_in = x[..., split:]
        cp_in = _round_up(x2_in.shape[-1], LANE)
        x2p = _pad_channels(x2_in, cp_in).astype(compute_dtype)
        x2 = _branch2(x2p, params["b2"], stride, compute_dtype)[..., :cout]
    else:
        cp_in = _round_up(x.shape[-1], LANE)
        xp = _pad_channels(x, cp_in).astype(compute_dtype)
        x1 = _branch1(xp, params["b1"], stride, compute_dtype)[..., :cout]
        x2 = _branch2(xp, params["b2"], stride, compute_dtype)[..., :cout]

    out = jnp.concatenate([x1.astype(jnp.float32), x2.astype(jnp.float32)], axis=-1)
    out = _channel_shuffle_nhwc(out, 2)
    return jnp.transpose(out, (0, 3, 1, 2)).astype(x_nchw.dtype)  # NHWC -> NCHW


# ----------------------------------------------------------------------------
# Pure-JAX reference (correctness check only)
# ----------------------------------------------------------------------------
def _ref_pw(x, wmat, scale, bias, relu):
    y = jnp.einsum("bhwc,cd->bhwd", x, wmat)
    y = y * scale + bias
    return jnp.maximum(y, 0.0) if relu else y


def _ref_dw(x, wdw, scale, bias, stride):
    c = x.shape[-1]
    y = lax.conv_general_dilated(
        x, wdw.reshape(3, 3, 1, c),
        window_strides=(stride, stride),
        padding=((1, 1), (1, 1)),
        dimension_numbers=("NHWC", "HWIO", "NHWC"),
        feature_group_count=c)
    return y * scale + bias


def inverted_residual_ref(x_nchw, params, stride):
    x = jnp.transpose(x_nchw, (0, 2, 3, 1))
    if stride == 1:
        split = x.shape[-1] // 2
        x1 = x[..., :split]
        p = params["b2"]
        x2 = _ref_pw(x[..., split:], p["pw1_w"], p["bn1_s"], p["bn1_b"], True)
        x2 = _ref_dw(x2, p["dw_w"], p["bn2_s"], p["bn2_b"], stride)
        x2 = _ref_pw(x2, p["pw2_w"], p["bn3_s"], p["bn3_b"], True)
    else:
        p1, p2 = params["b1"], params["b2"]
        x1 = _ref_dw(x, p1["dw_w"], p1["bn1_s"], p1["bn1_b"], stride)
        x1 = _ref_pw(x1, p1["pw_w"], p1["bn2_s"], p1["bn2_b"], True)
        x2 = _ref_pw(x, p2["pw1_w"], p2["bn1_s"], p2["bn1_b"], True)
        x2 = _ref_dw(x2, p2["dw_w"], p2["bn2_s"], p2["bn2_b"], stride)
        x2 = _ref_pw(x2, p2["pw2_w"], p2["bn3_s"], p2["bn3_b"], True)
    out = jnp.concatenate([x1, x2], axis=-1)
    out = _channel_shuffle_nhwc(out, 2)
    return jnp.transpose(out, (0, 3, 1, 2))


# ----------------------------------------------------------------------------
# Deterministic parameter init (BatchNorm folded to scale/bias, eps=1e-5)
# ----------------------------------------------------------------------------
def init_params(key, cin, cout, stride):
    keys = iter(jax.random.split(key, 32))

    def conv(k, shape):
        return jax.random.normal(k, shape, jnp.float32) * 0.2

    def bn(k, c):
        k1, k2, k3, k4 = jax.random.split(k, 4)
        gamma = jax.random.uniform(k1, (c,), jnp.float32, 0.5, 1.5)
        beta = jax.random.normal(k2, (c,), jnp.float32) * 0.1
        mean = jax.random.normal(k3, (c,), jnp.float32) * 0.1
        var = jax.random.uniform(k4, (c,), jnp.float32, 0.5, 1.5)
        scale = gamma / jnp.sqrt(var + 1e-5)
        return scale, beta - mean * scale

    params = {}
    if stride > 1:
        s1, b1 = bn(next(keys), cin)
        s2, b2 = bn(next(keys), cout)
        params["b1"] = dict(
            dw_w=conv(next(keys), (3, 3, cin)), bn1_s=s1, bn1_b=b1,
            pw_w=conv(next(keys), (cin, cout)), bn2_s=s2, bn2_b=b2)
    s1, b1 = bn(next(keys), cout)
    s2, b2 = bn(next(keys), cout)
    s3, b3 = bn(next(keys), cout)
    params["b2"] = dict(
        pw1_w=conv(next(keys), (cin, cout)), bn1_s=s1, bn1_b=b1,
        dw_w=conv(next(keys), (3, 3, cout)), bn2_s=s2, bn2_b=b2,
        pw2_w=conv(next(keys), (cout, cout)), bn3_s=s3, bn3_b=b3)
    return params


# ----------------------------------------------------------------------------
if __name__ == "__main__":
    root = jax.random.PRNGKey(0)
    kx2, kp2, kx1, kp1 = jax.random.split(root, 4)

    cin, cout = 4, 4

    # --- stride = 2: downsampling block, both branches active ---
    x2in = jax.random.normal(kx2, (2, cin, 16, 16), jnp.float32)
    params2 = init_params(kp2, cin, cout, stride=2)
    ref2 = np.asarray(inverted_residual_ref(x2in, params2, 2))

    out2 = jax.block_until_ready(
        inverted_residual(x2in, params2, stride=2, compute_dtype=jnp.float32))
    assert out2.shape == (2, 2 * cout, 8, 8), out2.shape
    np.testing.assert_allclose(np.asarray(out2), ref2, rtol=2e-3, atol=2e-3)

    out2_bf16 = jax.block_until_ready(
        inverted_residual(x2in, params2, stride=2, compute_dtype=jnp.bfloat16))
    np.testing.assert_allclose(np.asarray(out2_bf16), ref2, rtol=1e-1, atol=1e-1)

    # --- stride = 1: channel-split block (input channels = 2 * in_channels) ---
    x1in = jax.random.normal(kx1, (2, 2 * cin, 16, 16), jnp.float32)
    params1 = init_params(kp1, cin, cout, stride=1)
    ref1 = np.asarray(inverted_residual_ref(x1in, params1, 1))

    out1 = jax.block_until_ready(
        inverted_residual(x1in, params1, stride=1, compute_dtype=jnp.float32))
    assert out1.shape == (2, cin + cout, 16, 16), out1.shape
    np.testing.assert_allclose(np.asarray(out1), ref1, rtol=2e-3, atol=2e-3)

    out1_bf16 = jax.block_until_ready(
        inverted_residual(x1in, params1, stride=1, compute_dtype=jnp.bfloat16))
    np.testing.assert_allclose(np.asarray(out1_bf16), ref1, rtol=1e-1, atol=1e-1)

    print("KERNEL_OK")
</pallas_src>

<mosaic_0001>
module attributes {stable_mosaic.version = 11 : i64} {
  func.func @_pw_conv_bn_kernel(%arg0: i32, %arg1: memref<512x128xf32, #tpu.memory_space<vmem>>, %arg2: memref<128x128xf32, #tpu.memory_space<vmem>>, %arg3: memref<1x128xf32, #tpu.memory_space<vmem>>, %arg4: memref<512x128xf32, #tpu.memory_space<vmem>>) attributes {dimension_semantics = [#tpu.dimension_semantics<parallel>], iteration_bounds = array<i64: 1>, scalar_prefetch = 0 : i64, scratch_operands = 0 : i64, tpu.core_type = #tpu.core_type<tc>, window_params = [{transform_indices = @transform_0, window_bounds = array<i64: 512, 128>}, {pipeline_mode = #tpu.pipeline_mode<synchronous>, transform_indices = @transform_1, window_bounds = array<i64: 128, 128>}, {pipeline_mode = #tpu.pipeline_mode<synchronous>, transform_indices = @transform_2, window_bounds = array<i64: 1, 128>}, {transform_indices = @transform_3, window_bounds = array<i64: 512, 128>}]} {
    %c0 = arith.constant 0 : index
    %c0_0 = arith.constant 0 : index
    %0 = vector.load %arg1[%c0, %c0_0] : memref<512x128xf32, #tpu.memory_space<vmem>>, vector<512x128xf32>
    %c0_1 = arith.constant 0 : index
    %c0_2 = arith.constant 0 : index
    %1 = vector.load %arg2[%c0_1, %c0_2] : memref<128x128xf32, #tpu.memory_space<vmem>>, vector<128x128xf32>
    %cst = arith.constant dense<0.000000e+00> : vector<512x128xf32>
    %2 = tpu.matmul %0, %1, %cst {dimension_numbers = #tpu.dot_dimension_numbers<[1], [0], [0], [1], [0, 0, 1, 1], [], []>} : vector<512x128xf32>, vector<128x128xf32>, vector<512x128xf32> -> vector<512x128xf32>
    %c0_3 = arith.constant 0 : index
    %c0_4 = arith.constant 0 : index
    %3 = vector.load %arg3[%c0_3, %c0_4] : memref<1x128xf32, #tpu.memory_space<vmem>>, vector<1x128xf32>
    %4 = vector.broadcast %3 : vector<1x128xf32> to vector<512x128xf32>
    %5 = arith.addf %2, %4 : vector<512x128xf32>
    %cst_5 = arith.constant 0.000000e+00 : f32
    %6 = vector.broadcast %cst_5 : f32 to vector<512x128xf32>
    %7 = arith.maximumf %5, %6 : vector<512x128xf32>
    %c0_6 = arith.constant 0 : index
    %c0_7 = arith.constant 0 : index
    %8 = vector.load %arg4[%c0_6, %c0_7] : memref<512x128xf32, #tpu.memory_space<vmem>>, vector<512x128xf32>
    tpu.vector_store %arg4[%c0_6, %c0_7], %7 {strides = array<i32>} : memref<512x128xf32, #tpu.memory_space<vmem>>, vector<512x128xf32>,
    return
  }
  func.func @transform_0(%arg0: i32) -> (i32, i32) {
    %c0_i32 = arith.constant 0 : i32
    %c0_i32_0 = arith.constant 0 : i32
    return %arg0, %c0_i32 : i32, i32
  }
  func.func @transform_1(%arg0: i32) -> (i32, i32) {
    %c0_i32 = arith.constant 0 : i32
    %c0_i32_0 = arith.constant 0 : i32
    %c0_i32_1 = arith.constant 0 : i32
    return %c0_i32, %c0_i32_0 : i32, i32
  }
  func.func @transform_2(%arg0: i32) -> (i32, i32) {
    %c0_i32 = arith.constant 0 : i32
    %c0_i32_0 = arith.constant 0 : i32
    %c0_i32_1 = arith.constant 0 : i32
    return %c0_i32, %c0_i32_0 : i32, i32
  }
  func.func @transform_3(%arg0: i32) -> (i32, i32) {
    %c0_i32 = arith.constant 0 : i32
    %c0_i32_0 = arith.constant 0 : i32
    return %arg0, %c0_i32 : i32, i32
  }
}

module attributes {stable_mosaic.version = 11 : i64} {
  func.func @_dw_conv_bn_kernel(%arg0: i32, %arg1: memref<1x16x16x128xf32, #tpu.memory_space<vmem>>, %arg2: memref<9x128xf32, #tpu.memory_space<vmem>>, %arg3: memref<1x128xf32, #tpu.memory_space<vmem>>, %arg4: memref<1x8x8x128xf32, #tpu.memory_space<vmem>>, %arg5: memref<1x18x18x128xf32, #tpu.memory_space<vmem>>) attributes {dimension_semantics = [#tpu.dimension_semantics<parallel>], iteration_bounds = array<i64: 2>, scalar_prefetch = 0 : i64, scratch_operands = 1 : i64, tpu.core_type = #tpu.core_type<tc>, window_params = [{transform_indices = @transform_0, window_bounds = array<i64: 1, 16, 16, 128>}, {pipeline_mode = #tpu.pipeline_mode<synchronous>, transform_indices = @transform_1, window_bounds = array<i64: 9, 128>}, {pipeline_mode = #tpu.pipeline_mode<synchronous>, transform_indices = @transform_2, window_bounds = array<i64: 1, 128>}, {transform_indices = @transform_3, window_bounds = array<i64: 1, 8, 8, 128>}]} {
    %cst = arith.constant 0.000000e+00 : f32
    %0 = vector.broadcast %cst : f32 to vector<1x18x18x128xf32>
    %c0 = arith.constant 0 : index
    %c0_0 = arith.constant 0 : index
    %c0_1 = arith.constant 0 : index
    %c0_2 = arith.constant 0 : index
    %1 = vector.load %arg5[%c0, %c0_0, %c0_1, %c0_2] : memref<1x18x18x128xf32, #tpu.memory_space<vmem>>, vector<1x18x18x128xf32>
    tpu.vector_store %arg5[%c0, %c0_0, %c0_1, %c0_2], %0 {strides = array<i32>} : memref<1x18x18x128xf32, #tpu.memory_space<vmem>>, vector<1x18x18x128xf32>,
    %c0_3 = arith.constant 0 : index
    %c0_4 = arith.constant 0 : index
    %c0_5 = arith.constant 0 : index
    %c0_6 = arith.constant 0 : index
    %2 = vector.load %arg1[%c0_3, %c0_4, %c0_5, %c0_6] : memref<1x16x16x128xf32, #tpu.memory_space<vmem>>, vector<1x16x16x128xf32>
    %c0_7 = arith.constant 0 : index
    %c1 = arith.constant 1 : index
    %c1_8 = arith.constant 1 : index
    %c0_9 = arith.constant 0 : index
    %3 = vector.load %arg5[%c0_7, %c1, %c1_8, %c0_9] : memref<1x18x18x128xf32, #tpu.memory_space<vmem>>, vector<1x16x16x128xf32>
    tpu.vector_store %arg5[%c0_7, %c1, %c1_8, %c0_9], %2 {strides = array<i32>} : memref<1x18x18x128xf32, #tpu.memory_space<vmem>>, vector<1x16x16x128xf32>,
    %c0_10 = arith.constant 0 : index
    %c0_11 = arith.constant 0 : index
    %4 = vector.load %arg2[%c0_10, %c0_11] : memref<9x128xf32, #tpu.memory_space<vmem>>, vector<9x128xf32>
    %cst_12 = arith.constant 0.000000e+00 : f32
    %5 = vector.broadcast %cst_12 : f32 to vector<1x8x8x128xf32>
    %c0_13 = arith.constant 0 : index
    %c0_14 = arith.constant 0 : index
    %c0_15 = arith.constant 0 : index
    %c0_16 = arith.constant 0 : index
    %6 = tpu.strided_load %arg5[%c0_13, %c0_14, %c0_15, %c0_16] {strides = array<i32: 1, 2, 2, 1>} : memref<1x18x18x128xf32, #tpu.memory_space<vmem>>, vector<1x8x8x128xf32>
    %7 = vector.extract_strided_slice %4 {offsets = [0, 0], sizes = [1, 128], strides = [1, 1]} : vector<9x128xf32> to vector<1x128xf32>
    %8 = vector.shape_cast %7 : vector<1x128xf32> to vector<1x1x1x128xf32>
    %9 = vector.broadcast %8 : vector<1x1x1x128xf32> to vector<1x8x8x128xf32>
    %10 = arith.mulf %6, %9 : vector<1x8x8x128xf32>
    %11 = arith.addf %5, %10 : vector<1x8x8x128xf32>
    %c0_17 = arith.constant 0 : index
    %c0_18 = arith.constant 0 : index
    %c1_19 = arith.constant 1 : index
    %c0_20 = arith.constant 0 : index
    %12 = tpu.strided_load %arg5[%c0_17, %c0_18, %c1_19, %c0_20] {strides = array<i32: 1, 2, 2, 1>} : memref<1x18x18x128xf32, #tpu.memory_space<vmem>>, vector<1x8x8x128xf32>
    %13 = vector.extract_strided_slice %4 {offsets = [1, 0], sizes = [1, 128], strides = [1, 1]} : vector<9x128xf32> to vector<1x128xf32>
    %14 = vector.shape_cast %13 : vector<1x128xf32> to vector<1x1x1x128xf32>
    %15 = vector.broadcast %14 : vector<1x1x1x128xf32> to vector<1x8x8x128xf32>
    %16 = arith.mulf %12, %15 : vector<1x8x8x128xf32>
    %17 = arith.addf %11, %16 : vector<1x8x8x128xf32>
    %c0_21 = arith.constant 0 : index
    %c0_22 = arith.constant 0 : index
    %c2 = arith.constant 2 : index
    %c0_23 = arith.constant 0 : index
    %18 = tpu.strided_load %arg5[%c0_21, %c0_22, %c2, %c0_23] {strides = array<i32: 1, 2, 2, 1>} : memref<1x18x18x128xf32, #tpu.memory_space<vmem>>, vector<1x8x8x128xf32>
    %19 = vector.extract_strided_slice %4 {offsets = [2, 0], sizes = [1, 128], strides = [1, 1]} : vector<9x128xf32> to vector<1x128xf32>
    %20 = vector.shape_cast %19 : vector<1x128xf32> to vector<1x1x1x128xf32>
    %21 = vector.broadcast %20 : vector<1x1x1x128xf32> to vector<1x8x8x128xf32>
    %22 = arith.mulf %18, %21 : vector<1x8x8x128xf32>
    %23 = arith.addf %17, %22 : vector<1x8x8x128xf32>
    %c0_24 = arith.constant 0 : index
    %c1_25 = arith.constant 1 : index
    %c0_26 = arith.constant 0 : index
    %c0_27 = arith.constant 0 : index
    %24 = tpu.strided_load %arg5[%c0_24, %c1_25, %c0_26, %c0_27] {strides = array<i32: 1, 2, 2, 1>} : memref<1x18x18x128xf32, #tpu.memory_space<vmem>>, vector<1x8x8x128xf32>
    %25 = vector.extract_strided_slice %4 {offsets = [3, 0], sizes = [1, 128], strides = [1, 1]} : vector<9x128xf32> to vector<1x128xf32>
    %26 = vector.shape_cast %25 : vector<1x128xf32> to vector<1x1x1x128xf32>
    %27 = vector.broadcast %26 : vector<1x1x1x128xf32> to vector<1x8x8x128xf32>
    %28 = arith.mulf %24, %27 : vector<1x8x8x128xf32>
    %29 = arith.addf %23, %28 : vector<1x8x8x128xf32>
    %c0_28 = arith.constant 0 : index
    %c1_29 = arith.constant 1 : index
    %c1_30 = arith.constant 1 : index
    %c0_31 = arith.constant 0 : index
    %30 = tpu.strided_load %arg5[%c0_28, %c1_29, %c1_30, %c0_31] {strides = array<i32: 1, 2, 2, 1>} : memref<1x18x18x128xf32, #tpu.memory_space<vmem>>, vector<1x8x8x128xf32>
    %31 = vector.extract_strided_slice %4 {offsets = [4, 0], sizes = [1, 128], strides = [1, 1]} : vector<9x128xf32> to vector<1x128xf32>
    %32 = vector.shape_cast %31 : vector<1x128xf32> to vector<1x1x1x128xf32>
    %33 = vector.broadcast %32 : vector<1x1x1x128xf32> to vector<1x8x8x128xf32>
    %34 = arith.mulf %30, %33 : vector<1x8x8x128xf32>
    %35 = arith.addf %29, %34 : vector<1x8x8x128xf32>
    %c0_32 = arith.constant 0 : index
    %c1_33 = arith.constant 1 : index
    %c2_34 = arith.constant 2 : index
    %c0_35 = arith.constant 0 : index
    %36 = tpu.strided_load %arg5[%c0_32, %c1_33, %c2_34, %c0_35] {strides = array<i32: 1, 2, 2, 1>} : memref<1x18x18x128xf32, #tpu.memory_space<vmem>>, vector<1x8x8x128xf32>
    %37 = vector.extract_strided_slice %4 {offsets = [5, 0], sizes = [1, 128], strides = [1, 1]} : vector<9x128xf32> to vector<1x128xf32>
    %38 = vector.shape_cast %37 : vector<1x128xf32> to vector<1x1x1x128xf32>
    %39 = vector.broadcast %38 : vector<1x1x1x128xf32> to vector<1x8x8x128xf32>
    %40 = arith.mulf %36, %39 : vector<1x8x8x128xf32>
    %41 = arith.addf %35, %40 : vector<1x8x8x128xf32>
    %c0_36 = arith.constant 0 : index
    %c2_37 = arith.constant 2 : index
    %c0_38 = arith.constant 0 : index
    %c0_39 = arith.constant 0 : index
    %42 = tpu.strided_load %arg5[%c0_36, %c2_37, %c0_38, %c0_39] {strides = array<i32: 1, 2, 2, 1>} : memref<1x18x18x128xf32, #tpu.memory_space<vmem>>, vector<1x8x8x128xf32>
    %43 = vector.extract_strided_slice %4 {offsets = [6, 0], sizes = [1, 128], strides = [1, 1]} : vector<9x128xf32> to vector<1x128xf32>
    %44 = vector.shape_cast %43 : vector<1x128xf32> to vector<1x1x1x128xf32>
    %45 = vector.broadcast %44 : vector<1x1x1x128xf32> to vector<1x8x8x128xf32>
    %46 = arith.mulf %42, %45 : vector<1x8x8x128xf32>
    %47 = arith.addf %41, %46 : vector<1x8x8x128xf32>
    %c0_40 = arith.constant 0 : index
    %c2_41 = arith.constant 2 : index
    %c1_42 = arith.constant 1 : index
    %c0_43 = arith.constant 0 : index
    %48 = tpu.strided_load %arg5[%c0_40, %c2_41, %c1_42, %c0_43] {strides = array<i32: 1, 2, 2, 1>} : memref<1x18x18x128xf32, #tpu.memory_space<vmem>>, vector<1x8x8x128xf32>
    %49 = vector.extract_strided_slice %4 {offsets = [7, 0], sizes = [1, 128], strides = [1, 1]} : vector<9x128xf32> to vector<1x128xf32>
    %50 = vector.shape_cast %49 : vector<1x128xf32> to vector<1x1x1x128xf32>
    %51 = vector.broadcast %50 : vector<1x1x1x128xf32> to vector<1x8x8x128xf32>
    %52 = arith.mulf %48, %51 : vector<1x8x8x128xf32>
    %53 = arith.addf %47, %52 : vector<1x8x8x128xf32>
    %c0_44 = arith.constant 0 : index
    %c2_45 = arith.constant 2 : index
    %c2_46 = arith.constant 2 : index
    %c0_47 = arith.constant 0 : index
    %54 = tpu.strided_load %arg5[%c0_44, %c2_45, %c2_46, %c0_47] {strides = array<i32: 1, 2, 2, 1>} : memref<1x18x18x128xf32, #tpu.memory_space<vmem>>, vector<1x8x8x128xf32>
    %55 = vector.extract_strided_slice %4 {offsets = [8, 0], sizes = [1, 128], strides = [1, 1]} : vector<9x128xf32> to vector<1x128xf32>
    %56 = vector.shape_cast %55 : vector<1x128xf32> to vector<1x1x1x128xf32>
    %57 = vector.broadcast %56 : vector<1x1x1x128xf32> to vector<1x8x8x128xf32>
    %58 = arith.mulf %54, %57 : vector<1x8x8x128xf32>
    %59 = arith.addf %53, %58 : vector<1x8x8x128xf32>
    %c0_48 = arith.constant 0 : index
    %c0_49 = arith.constant 0 : index
    %60 = vector.load %arg3[%c0_48, %c0_49] : memref<1x128xf32, #tpu.memory_space<vmem>>, vector<1x128xf32>
    %61 = vector.shape_cast %60 : vector<1x128xf32> to vector<1x1x1x128xf32>
    %62 = vector.broadcast %61 : vector<1x1x1x128xf32> to vector<1x8x8x128xf32>
    %63 = arith.addf %59, %62 : vector<1x8x8x128xf32>
    %c0_50 = arith.constant 0 : index
    %c0_51 = arith.constant 0 : index
    %c0_52 = arith.constant 0 : index
    %c0_53 = arith.constant 0 : index
    %64 = vector.load %arg4[%c0_50, %c0_51, %c0_52, %c0_53] : memref<1x8x8x128xf32, #tpu.memory_space<vmem>>, vector<1x8x8x128xf32>
    tpu.vector_store %arg4[%c0_50, %c0_51, %c0_52, %c0_53], %63 {strides = array<i32>} : memref<1x8x8x128xf32, #tpu.memory_space<vmem>>, vector<1x8x8x128xf32>,
    return
  }
  func.func @transform_0(%arg0: i32) -> (i32, i32, i32, i32) {
    %c0_i32 = arith.constant 0 : i32
    %c0_i32_0 = arith.constant 0 : i32
    %c0_i32_1 = arith.constant 0 : i32
    %c0_i32_2 = arith.constant 0 : i32
    return %arg0, %c0_i32, %c0_i32_0, %c0_i32_1 : i32, i32, i32, i32
  }
  func.func @transform_1(%arg0: i32) -> (i32, i32) {
    %c0_i32 = arith.constant 0 : i32
    %c0_i32_0 = arith.constant 0 : i32
    %c0_i32_1 = arith.constant 0 : i32
    return %c0_i32, %c0_i32_0 : i32, i32
  }
  func.func @transform_2(%arg0: i32) -> (i32, i32) {
    %c0_i32 = arith.constant 0 : i32
    %c0_i32_0 = arith.constant 0 : i32
    %c0_i32_1 = arith.constant 0 : i32
    return %c0_i32, %c0_i32_0 : i32, i32
  }
  func.func @transform_3(%arg0: i32) -> (i32, i32, i32, i32) {
    %c0_i32 = arith.constant 0 : i32
    %c0_i32_0 = arith.constant 0 : i32
    %c0_i32_1 = arith.constant 0 : i32
    %c0_i32_2 = arith.constant 0 : i32
    return %arg0, %c0_i32, %c0_i32_0, %c0_i32_1 : i32, i32, i32, i32
  }
}

module attributes {stable_mosaic.version = 11 : i64} {
  func.func @_pw_conv_bn_kernel(%arg0: i32, %arg1: memref<128x128xf32, #tpu.memory_space<vmem>>, %arg2: memref<128x128xf32, #tpu.memory_space<vmem>>, %arg3: memref<1x128xf32, #tpu.memory_space<vmem>>, %arg4: memref<128x128xf32, #tpu.memory_space<vmem>>) attributes {dimension_semantics = [#tpu.dimension_semantics<parallel>], iteration_bounds = array<i64: 1>, scalar_prefetch = 0 : i64, scratch_operands = 0 : i64, tpu.core_type = #tpu.core_type<tc>, window_params = [{transform_indices = @transform_0, window_bounds = array<i64: 128, 128>}, {pipeline_mode = #tpu.pipeline_mode<synchronous>, transform_indices = @transform_1, window_bounds = array<i64: 128, 128>}, {pipeline_mode = #tpu.pipeline_mode<synchronous>, transform_indices = @transform_2, window_bounds = array<i64: 1, 128>}, {transform_indices = @transform_3, window_bounds = array<i64: 128, 128>}]} {
    %c0 = arith.constant 0 : index
    %c0_0 = arith.constant 0 : index
    %0 = vector.load %arg1[%c0, %c0_0] : memref<128x128xf32, #tpu.memory_space<vmem>>, vector<128x128xf32>
    %c0_1 = arith.constant 0 : index
    %c0_2 = arith.constant 0 : index
    %1 = vector.load %arg2[%c0_1, %c0_2] : memref<128x128xf32, #tpu.memory_space<vmem>>, vector<128x128xf32>
    %cst = arith.constant dense<0.000000e+00> : vector<128x128xf32>
    %2 = tpu.matmul %0, %1, %cst {dimension_numbers = #tpu.dot_dimension_numbers<[1], [0], [0], [1], [0, 0, 1, 1], [], []>} : vector<128x128xf32>, vector<128x128xf32>, vector<128x128xf32> -> vector<128x128xf32>
    %c0_3 = arith.constant 0 : index
    %c0_4 = arith.constant 0 : index
    %3 = vector.load %arg3[%c0_3, %c0_4] : memref<1x128xf32, #tpu.memory_space<vmem>>, vector<1x128xf32>
    %4 = vector.broadcast %3 : vector<1x128xf32> to vector<128x128xf32>
    %5 = arith.addf %2, %4 : vector<128x128xf32>
    %cst_5 = arith.constant 0.000000e+00 : f32
    %6 = vector.broadcast %cst_5 : f32 to vector<128x128xf32>
    %7 = arith.maximumf %5, %6 : vector<128x128xf32>
    %c0_6 = arith.constant 0 : index
    %c0_7 = arith.constant 0 : index
    %8 = vector.load %arg4[%c0_6, %c0_7] : memref<128x128xf32, #tpu.memory_space<vmem>>, vector<128x128xf32>
    tpu.vector_store %arg4[%c0_6, %c0_7], %7 {strides = array<i32>} : memref<128x128xf32, #tpu.memory_space<vmem>>, vector<128x128xf32>,
    return
  }
  func.func @transform_0(%arg0: i32) -> (i32, i32) {
    %c0_i32 = arith.constant 0 : i32
    %c0_i32_0 = arith.constant 0 : i32
    return %arg0, %c0_i32 : i32, i32
  }
  func.func @transform_1(%arg0: i32) -> (i32, i32) {
    %c0_i32 = arith.constant 0 : i32
    %c0_i32_0 = arith.constant 0 : i32
    %c0_i32_1 = arith.constant 0 : i32
    return %c0_i32, %c0_i32_0 : i32, i32
  }
  func.func @transform_2(%arg0: i32) -> (i32, i32) {
    %c0_i32 = arith.constant 0 : i32
    %c0_i32_0 = arith.constant 0 : i32
    %c0_i32_1 = arith.constant 0 : i32
    return %c0_i32, %c0_i32_0 : i32, i32
  }
  func.func @transform_3(%arg0: i32) -> (i32, i32) {
    %c0_i32 = arith.constant 0 : i32
    %c0_i32_0 = arith.constant 0 : i32
    return %arg0, %c0_i32 : i32, i32
  }
}

</mosaic_0001>

<bundles_post_ra>
// kernel: inverted_residual.9
= control target key start
LH: loop header
LB: loop body
LE: loop exit
PB: predicated region body
PF: predicated region fallthrough
CT: control target
= control target key end

     0   :  { %s538_s1 = inlined_call_operand.vmem [shape: f32[128,128], index: 1, kind: input, shape index: {}]   ;;  %s539_s0 = inlined_call_operand.vmem [shape: f32[128,128], index: 0, kind: input, shape index: {}]   ;;  %s540_s2 = inlined_call_operand.vmem [shape: f32[1,128], index: 2, kind: input, shape index: {}]   ;;  %s541_s3 = inlined_call_operand.vmem [shape: f32[128,128], index: 3, kind: output, shape index: {}]  }
   0x1   :  { %v30_v0 = vld [vmem:[%s538_s1] sm:$0xff]  ;;  %v31_v1 = vld [vmem:[%s538_s1 + $0x8] sm:$0xff]  ;;  %v32_v2 = vld [vmem:[%s538_s1 + $0x10] sm:$0xff] }
   0x2   :  { %v323_v3 = vpack.c.bf16 %v31_v1, %v30_v0  ;;  %v33_v4 = vld [vmem:[%s538_s1 + $0x18] sm:$0xff]  ;;  %v34_v6 = vld [vmem:[%s538_s1 + $0x20] sm:$0xff]  ;;  %v35_v7 = vld [vmem:[%s538_s1 + $0x28] sm:$0xff] }
   0x3   :  { %v327_v5 = vpack.c.bf16 %v33_v4, %v32_v2  ;;  %v331_v8 = vpack.c.bf16 %v35_v7, %v34_v6  ;;  %v14_v9 = vld [vmem:[%s539_s0] sm:$0xff]  ;;  %v36_v11 = vld [vmem:[%s538_s1 + $0x30] sm:$0xff]  ;;  %v37_v12 = vld [vmem:[%s538_s1 + $0x38] sm:$0xff] }
   0x4   :  { %324 = vmatprep.subr.bf16.mxu0 %v323_v3  ;;  %355 = vmatprep.subr.bf16.mxu1 %v323_v3  ;;  %v22_v10 = vld [vmem:[%s539_s0 + $0x40] sm:$0xff]  ;;  %v335_v13 = vpack.c.bf16 %v37_v12, %v36_v11  ;;  %v39_v15 = vld [vmem:[%s538_s1 + $0x48] sm:$0xff]  ;;  %v40_v17 = vld [vmem:[%s538_s1 + $0x50] sm:$0xff] }
   0x5   :  { %326 = vmatpush3.bf16.msra.mxu0 %v323_v3  ;;  %363 = vmatpush3.bf16.msra.mxu1 %v323_v3  ;;  %v38_v14 = vld [vmem:[%s538_s1 + $0x40] sm:$0xff]  ;;  %v41_v18 = vld [vmem:[%s538_s1 + $0x58] sm:$0xff]  ;;  %v43_v21 = vld [vmem:[%s538_s1 + $0x68] sm:$0xff] }
   0x6   :  { %328 = vmatprep.subr.bf16.mxu0 %v327_v5  ;;  %356 = vmatprep.subr.bf16.mxu1 %v327_v5  ;;  %v339_v16 = vpack.c.bf16 %v39_v15, %v38_v14  ;;  %v343_v19 = vpack.c.bf16 %v41_v18, %v40_v17  ;;  %v42_v20 = vld [vmem:[%s538_s1 + $0x60] sm:$0xff]  ;;  %v44_v23 = vld [vmem:[%s538_s1 + $0x70] sm:$0xff]  ;;  %v45_v24 = vld [vmem:[%s538_s1 + $0x78] sm:$0xff] }
   0x7   :  { %299 = vmatprep.mubr.f32.mxu0 %v14_v9  ;;  %311 = vmatprep.mubr.f32.mxu1 %v22_v10  ;;  %v347_v22 = vpack.c.bf16 %v43_v21, %v42_v20  ;;  %v351_v25 = vpack.c.bf16 %v45_v24, %v44_v23  ;;  %v15_v26 = vld [vmem:[%s539_s0 + $0x8] sm:$0xff]  ;;  %v16_v28 = vld [vmem:[%s539_s0 + $0x10] sm:$0xff]  ;;  %v17_v30 = vld [vmem:[%s539_s0 + $0x18] sm:$0xff] }
   0x8   :  { %v23_v27 = vld [vmem:[%s539_s0 + $0x48] sm:$0xff]  ;;  %v24_v29 = vld [vmem:[%s539_s0 + $0x50] sm:$0xff]  ;;  %v25_v31 = vld [vmem:[%s539_s0 + $0x58] sm:$0xff] }
   0x9   :  { %330 = vmatpush3.bf16.msra.mxu0 %v327_v5  ;;  %364 = vmatpush3.bf16.msra.mxu1 %v327_v5  ;;  %v18_v32 = vld [vmem:[%s539_s0 + $0x20] sm:$0xff]  ;;  %v19_v34 = vld [vmem:[%s539_s0 + $0x28] sm:$0xff]  ;;  %v20_v36 = vld [vmem:[%s539_s0 + $0x30] sm:$0xff] }
   0xa   :  { %332 = vmatprep.subr.bf16.mxu0 %v331_v8  ;;  %357 = vmatprep.subr.bf16.mxu1 %v331_v8  ;;  %v26_v33 = vld [vmem:[%s539_s0 + $0x60] sm:$0xff]  ;;  %v27_v35 = vld [vmem:[%s539_s0 + $0x68] sm:$0xff]  ;;  %v28_v37 = vld [vmem:[%s539_s0 + $0x70] sm:$0xff] }
   0xb   :  { %v21_v38 = vld [vmem:[%s539_s0 + $0x38] sm:$0xff]  ;;  %v234_v40 = vld [vmem:[%s540_s2] ss:$0 sm:$0xff] }
   0xc   :  { %v29_v39 = vld [vmem:[%s539_s0 + $0x78] sm:$0xff] }
   0xd   :  { %334 = vmatpush3.bf16.msra.mxu0 %v331_v8  ;;  %365 = vmatpush3.bf16.msra.mxu1 %v331_v8 }
   0xe   :  { %336 = vmatprep.subr.bf16.mxu0 %v335_v13  ;;  %358 = vmatprep.subr.bf16.mxu1 %v335_v13 }
  0x11   :  { %338 = vmatpush3.bf16.msra.mxu0 %v335_v13  ;;  %366 = vmatpush3.bf16.msra.mxu1 %v335_v13 }
  0x12   :  { %340 = vmatprep.subr.bf16.mxu0 %v339_v16  ;;  %359 = vmatprep.subr.bf16.mxu1 %v339_v16 }
  0x15   :  { %342 = vmatpush3.bf16.msra.mxu0 %v339_v16  ;;  %367 = vmatpush3.bf16.msra.mxu1 %v339_v16 }
  0x16   :  { %344 = vmatprep.subr.bf16.mxu0 %v343_v19  ;;  %360 = vmatprep.subr.bf16.mxu1 %v343_v19 }
  0x19   :  { %346 = vmatpush3.bf16.msra.mxu0 %v343_v19  ;;  %368 = vmatpush3.bf16.msra.mxu1 %v343_v19 }
  0x1a   :  { %348 = vmatprep.subr.bf16.mxu0 %v347_v22  ;;  %361 = vmatprep.subr.bf16.mxu1 %v347_v22 }
  0x1d   :  { %350 = vmatpush3.bf16.msra.mxu0 %v347_v22  ;;  %369 = vmatpush3.bf16.msra.mxu1 %v347_v22 }
  0x1e   :  { %352 = vmatprep.subr.bf16.mxu0 %v351_v25  ;;  %362 = vmatprep.subr.bf16.mxu1 %v351_v25 }
  0x21   :  { %354 = vmatpush3.bf16.msra.mxu0 %v351_v25  ;;  %370 = vmatpush3.bf16.msra.mxu1 %v351_v25 }
  0x24   :  { %300 = vmatmul.mubr.f32.vlgmr.msra.gmra.mrb[0].mxu0 %v15_v26  ;;  %312 = vmatmul.mubr.f32.vlgmr.msra.gmra.mrb[0].mxu1 %v23_v27 }
  0x25   :  { %302 = vmatprep.mubr.f32.mxu0 %v16_v28  ;;  %314 = vmatprep.mubr.f32.mxu1 %v24_v29 }
  0x28   :  { %303 = vmatmul.mubr.f32.gmra.mrb[2].mxu0 %v17_v30  ;;  %315 = vmatmul.mubr.f32.gmra.mrb[2].mxu1 %v25_v31 }
  0x29   :  { %305 = vmatprep.mubr.f32.mxu0 %v18_v32  ;;  %317 = vmatprep.mubr.f32.mxu1 %v26_v33 }
  0x2c   :  { %306 = vmatmul.mubr.f32.gmra.mrb[4].mxu0 %v19_v34  ;;  %318 = vmatmul.mubr.f32.gmra.mrb[4].mxu1 %v27_v35 }
  0x2d   :  { %308 = vmatprep.mubr.f32.mxu0 %v20_v36  ;;  %320 = vmatprep.mubr.f32.mxu1 %v28_v37 }
  0x30   :  { %309 = vmatmul.mubr.f32.gmra.mrb[6].mxu0 %v21_v38  ;;  %321 = vmatmul.mubr.f32.gmra.mrb[6].mxu1 %v29_v39 }
  0xf7   :  { %v301_v41 = vpop.f32.mrb[0].mxu0  ;;  %v313_v42 = vpop.f32.mrb[0].mxu1 }
  0xf8   :  { %v125_v43 = vadd.f32 %v301_v41, %v234_v40  ;;  %v165_v44 = vadd.f32 %v313_v42, %v234_v40  ;;  %v119_v45 = vpop.f32.mrb[1].mxu0  ;;  %v159_v46 = vpop.f32.mrb[1].mxu1 }
  0xf9   :  { %v120_v47 = vadd.f32 %v234_v40, %v119_v45  ;;  %v160_v48 = vadd.f32 %v234_v40, %v159_v46 }
  0xfa   :  { %v199_v49 = vmax.f32 %v125_v43, 0.0  ;;  %v207_v50 = vmax.f32 %v165_v44, 0.0 }
  0xfb   :  { %v198_v51 = vmax.f32 %v120_v47, 0.0  ;;  %v206_v52 = vmax.f32 %v160_v48, 0.0  ;;  %v304_v53 = vpop.f32.mrb[2].mxu0  ;;  %v316_v54 = vpop.f32.mrb[2].mxu1 }
  0xfc   :  { %215 = vst [vmem:[%s541_s3 + $0x8] sm:$0xff] %v199_v49  ;;  %223 = vst [vmem:[%s541_s3 + $0x48] sm:$0xff] %v207_v50  ;;  %v135_v55 = vadd.f32 %v304_v53, %v234_v40  ;;  %v175_v56 = vadd.f32 %v316_v54, %v234_v40  ;;  %v129_v57 = vpop.f32.mrb[3].mxu0  ;;  %v169_v58 = vpop.f32.mrb[3].mxu1 }
  0xfd   :  { %214 = vst [vmem:[%s541_s3] sm:$0xff] %v198_v51  ;;  %222 = vst [vmem:[%s541_s3 + $0x40] sm:$0xff] %v206_v52  ;;  %v130_v59 = vadd.f32 %v234_v40, %v129_v57  ;;  %v170_v60 = vadd.f32 %v234_v40, %v169_v58 }
  0xfe   :  { %v201_v61 = vmax.f32 %v135_v55, 0.0  ;;  %v209_v62 = vmax.f32 %v175_v56, 0.0 }
  0xff   :  { %v200_v63 = vmax.f32 %v130_v59, 0.0  ;;  %v208_v0 = vmax.f32 %v170_v60, 0.0  ;;  %v307_v1 = vpop.f32.mrb[4].mxu0  ;;  %v319_v2 = vpop.f32.mrb[4].mxu1 }
 0x100   :  { %217 = vst [vmem:[%s541_s3 + $0x18] sm:$0xff] %v201_v61  ;;  %225 = vst [vmem:[%s541_s3 + $0x58] sm:$0xff] %v209_v62  ;;  %v145_v3 = vadd.f32 %v307_v1, %v234_v40  ;;  %v185_v4 = vadd.f32 %v319_v2, %v234_v40  ;;  %v139_v5 = vpop.f32.mrb[5].mxu0  ;;  %v179_v6 = vpop.f32.mrb[5].mxu1 }
 0x101   :  { %216 = vst [vmem:[%s541_s3 + $0x10] sm:$0xff] %v200_v63  ;;  %224 = vst [vmem:[%s541_s3 + $0x50] sm:$0xff] %v208_v0  ;;  %v140_v7 = vadd.f32 %v234_v40, %v139_v5  ;;  %v180_v8 = vadd.f32 %v234_v40, %v179_v6 }
 0x102   :  { %v203_v9 = vmax.f32 %v145_v3, 0.0  ;;  %v211_v10 = vmax.f32 %v185_v4, 0.0 }
 0x103   :  { %v202_v11 = vmax.f32 %v140_v7, 0.0  ;;  %v210_v12 = vmax.f32 %v180_v8, 0.0  ;;  %v310_v13 = vpop.f32.mrb[6].mxu0  ;;  %v322_v14 = vpop.f32.mrb[6].mxu1 }
 0x104   :  { %219 = vst [vmem:[%s541_s3 + $0x28] sm:$0xff] %v203_v9  ;;  %227 = vst [vmem:[%s541_s3 + $0x68] sm:$0xff] %v211_v10  ;;  %v155_v15 = vadd.f32 %v310_v13, %v234_v40  ;;  %v195_v16 = vadd.f32 %v322_v14, %v234_v40  ;;  %v149_v17 = vpop.f32.mrb[7].mxu0  ;;  %v189_v18 = vpop.f32.mrb[7].mxu1 }
 0x105   :  { %218 = vst [vmem:[%s541_s3 + $0x20] sm:$0xff] %v202_v11  ;;  %226 = vst [vmem:[%s541_s3 + $0x60] sm:$0xff] %v210_v12  ;;  %v150_v19 = vadd.f32 %v234_v40, %v149_v17  ;;  %v190_v20 = vadd.f32 %v234_v40, %v189_v18 }
 0x106   :  { %v205_v21 = vmax.f32 %v155_v15, 0.0  ;;  %v213_v22 = vmax.f32 %v195_v16, 0.0 }
 0x107   :  { %v204_v23 = vmax.f32 %v150_v19, 0.0  ;;  %v212_v24 = vmax.f32 %v190_v20, 0.0 }
 0x108   :  { %221 = vst [vmem:[%s541_s3 + $0x38] sm:$0xff] %v205_v21  ;;  %229 = vst [vmem:[%s541_s3 + $0x78] sm:$0xff] %v213_v22 }
 0x109   :  { %220 = vst [vmem:[%s541_s3 + $0x30] sm:$0xff] %v204_v23  ;;  %228 = vst [vmem:[%s541_s3 + $0x70] sm:$0xff] %v212_v24 }

// kernel: inverted_residual.7
= control target key start
LH: loop header
LB: loop body
LE: loop exit
PB: predicated region body
PF: predicated region fallthrough
CT: control target
= control target key end

     0   :  { %s1396_s1 = inlined_call_operand.vmem [shape: f32[128,128], index: 1, kind: input, shape index: {}]   ;;  %s1397_s0 = inlined_call_operand.vmem [shape: f32[512,128], index: 0, kind: input, shape index: {}]   ;;  %s1398_s2 = inlined_call_operand.vmem [shape: f32[1,128], index: 2, kind: input, shape index: {}]   ;;  %s1399_s3 = inlined_call_operand.vmem [shape: f32[512,128], index: 3, kind: output, shape index: {}]  }
   0x1   :  { %v78_v0 = vld [vmem:[%s1396_s1] sm:$0xff]  ;;  %v79_v1 = vld [vmem:[%s1396_s1 + $0x8] sm:$0xff]  ;;  %v80_v2 = vld [vmem:[%s1396_s1 + $0x10] sm:$0xff] }
   0x2   :  { %v827_v3 = vpack.c.bf16 %v79_v1, %v78_v0  ;;  %v81_v4 = vld [vmem:[%s1396_s1 + $0x18] sm:$0xff]  ;;  %v82_v6 = vld [vmem:[%s1396_s1 + $0x20] sm:$0xff]  ;;  %v83_v7 = vld [vmem:[%s1396_s1 + $0x28] sm:$0xff] }
   0x3   :  { %v831_v5 = vpack.c.bf16 %v81_v4, %v80_v2  ;;  %v835_v8 = vpack.c.bf16 %v83_v7, %v82_v6  ;;  %v14_v9 = vld [vmem:[%s1397_s0] sm:$0xff]  ;;  %v84_v11 = vld [vmem:[%s1396_s1 + $0x30] sm:$0xff]  ;;  %v85_v12 = vld [vmem:[%s1396_s1 + $0x38] sm:$0xff] }
   0x4   :  { %828 = vmatprep.subr.bf16.mxu0 %v827_v3  ;;  %859 = vmatprep.subr.bf16.mxu1 %v827_v3  ;;  %v46_v10 = vld [vmem:[%s1397_s0 + $0x100] sm:$0xff]  ;;  %v839_v13 = vpack.c.bf16 %v85_v12, %v84_v11  ;;  %v87_v15 = vld [vmem:[%s1396_s1 + $0x48] sm:$0xff]  ;;  %v88_v17 = vld [vmem:[%s1396_s1 + $0x50] sm:$0xff] }
   0x5   :  { %830 = vmatpush3.bf16.msra.mxu0 %v827_v3  ;;  %867 = vmatpush3.bf16.msra.mxu1 %v827_v3  ;;  %v86_v14 = vld [vmem:[%s1396_s1 + $0x40] sm:$0xff]  ;;  %v89_v18 = vld [vmem:[%s1396_s1 + $0x58] sm:$0xff]  ;;  %v91_v21 = vld [vmem:[%s1396_s1 + $0x68] sm:$0xff] }
   0x6   :  { %832 = vmatprep.subr.bf16.mxu0 %v831_v5  ;;  %860 = vmatprep.subr.bf16.mxu1 %v831_v5  ;;  %v843_v16 = vpack.c.bf16 %v87_v15, %v86_v14  ;;  %v847_v19 = vpack.c.bf16 %v89_v18, %v88_v17  ;;  %v90_v20 = vld [vmem:[%s1396_s1 + $0x60] sm:$0xff]  ;;  %v92_v23 = vld [vmem:[%s1396_s1 + $0x70] sm:$0xff]  ;;  %v93_v24 = vld [vmem:[%s1396_s1 + $0x78] sm:$0xff] }
   0x7   :  { %731 = vmatprep.mubr.f32.mxu0 %v14_v9  ;;  %779 = vmatprep.mubr.f32.mxu1 %v46_v10  ;;  %v851_v22 = vpack.c.bf16 %v91_v21, %v90_v20  ;;  %v855_v25 = vpack.c.bf16 %v93_v24, %v92_v23  ;;  %v15_v26 = vld [vmem:[%s1397_s0 + $0x8] sm:$0xff]  ;;  %v16_v28 = vld [vmem:[%s1397_s0 + $0x10] sm:$0xff]  ;;  %v17_v30 = vld [vmem:[%s1397_s0 + $0x18] sm:$0xff] }
   0x8   :  { %v47_v27 = vld [vmem:[%s1397_s0 + $0x108] sm:$0xff]  ;;  %v48_v29 = vld [vmem:[%s1397_s0 + $0x110] sm:$0xff]  ;;  %v49_v31 = vld [vmem:[%s1397_s0 + $0x118] sm:$0xff] }
   0x9   :  { %834 = vmatpush3.bf16.msra.mxu0 %v831_v5  ;;  %868 = vmatpush3.bf16.msra.mxu1 %v831_v5  ;;  %v18_v32 = vld [vmem:[%s1397_s0 + $0x20] sm:$0xff]  ;;  %v19_v34 = vld [vmem:[%s1397_s0 + $0x28] sm:$0xff]  ;;  %v20_v36 = vld [vmem:[%s1397_s0 + $0x30] sm:$0xff] }
   0xa   :  { %836 = vmatprep.subr.bf16.mxu0 %v835_v8  ;;  %861 = vmatprep.subr.bf16.mxu1 %v835_v8  ;;  %v50_v33 = vld [vmem:[%s1397_s0 + $0x120] sm:$0xff]  ;;  %v51_v35 = vld [vmem:[%s1397_s0 + $0x128] sm:$0xff]  ;;  %v52_v37 = vld [vmem:[%s1397_s0 + $0x130] sm:$0xff] }
   0xb   :  { %v21_v38 = vld [vmem:[%s1397_s0 + $0x38] sm:$0xff]  ;;  %v22_v40 = vld [vmem:[%s1397_s0 + $0x40] sm:$0xff]  ;;  %v23_v42 = vld [vmem:[%s1397_s0 + $0x48] sm:$0xff] }
   0xc   :  { %v53_v39 = vld [vmem:[%s1397_s0 + $0x138] sm:$0xff]  ;;  %v54_v41 = vld [vmem:[%s1397_s0 + $0x140] sm:$0xff]  ;;  %v55_v43 = vld [vmem:[%s1397_s0 + $0x148] sm:$0xff] }
   0xd   :  { %838 = vmatpush3.bf16.msra.mxu0 %v835_v8  ;;  %869 = vmatpush3.bf16.msra.mxu1 %v835_v8  ;;  %v24_v44 = vld [vmem:[%s1397_s0 + $0x50] sm:$0xff]  ;;  %v25_v46 = vld [vmem:[%s1397_s0 + $0x58] sm:$0xff]  ;;  %v26_v48 = vld [vmem:[%s1397_s0 + $0x60] sm:$0xff] }
   0xe   :  { %840 = vmatprep.subr.bf16.mxu0 %v839_v13  ;;  %862 = vmatprep.subr.bf16.mxu1 %v839_v13  ;;  %v56_v45 = vld [vmem:[%s1397_s0 + $0x150] sm:$0xff]  ;;  %v57_v47 = vld [vmem:[%s1397_s0 + $0x158] sm:$0xff]  ;;  %v58_v49 = vld [vmem:[%s1397_s0 + $0x160] sm:$0xff] }
   0xf   :  { %v27_v50 = vld [vmem:[%s1397_s0 + $0x68] sm:$0xff]  ;;  %v28_v52 = vld [vmem:[%s1397_s0 + $0x70] sm:$0xff]  ;;  %v29_v54 = vld [vmem:[%s1397_s0 + $0x78] sm:$0xff] }
  0x10   :  { %v59_v51 = vld [vmem:[%s1397_s0 + $0x168] sm:$0xff]  ;;  %v60_v53 = vld [vmem:[%s1397_s0 + $0x170] sm:$0xff]  ;;  %v61_v55 = vld [vmem:[%s1397_s0 + $0x178] sm:$0xff] }
  0x11   :  { %842 = vmatpush3.bf16.msra.mxu0 %v839_v13  ;;  %870 = vmatpush3.bf16.msra.mxu1 %v839_v13  ;;  %v30_v56 = vld [vmem:[%s1397_s0 + $0x80] sm:$0xff]  ;;  %v31_v58 = vld [vmem:[%s1397_s0 + $0x88] sm:$0xff]  ;;  %v32_v60 = vld [vmem:[%s1397_s0 + $0x90] sm:$0xff] }
  0x12   :  { %844 = vmatprep.subr.bf16.mxu0 %v843_v16  ;;  %863 = vmatprep.subr.bf16.mxu1 %v843_v16  ;;  %v62_v57 = vld [vmem:[%s1397_s0 + $0x180] sm:$0xff]  ;;  %v63_v59 = vld [vmem:[%s1397_s0 + $0x188] sm:$0xff]  ;;  %v64_v61 = vld [vmem:[%s1397_s0 + $0x190] sm:$0xff] }
  0x13   :  { %v33_v62 = vld [vmem:[%s1397_s0 + $0x98] sm:$0xff]  ;;  %v34_v0 = vld [vmem:[%s1397_s0 + $0xa0] sm:$0xff]  ;;  %v35_v2 = vld [vmem:[%s1397_s0 + $0xa8] sm:$0xff] }
  0x14   :  { %v65_v63 = vld [vmem:[%s1397_s0 + $0x198] sm:$0xff]  ;;  %v66_v1 = vld [vmem:[%s1397_s0 + $0x1a0] sm:$0xff]  ;;  %v67_v3 = vld [vmem:[%s1397_s0 + $0x1a8] sm:$0xff] }
  0x15   :  { %846 = vmatpush3.bf16.msra.mxu0 %v843_v16  ;;  %871 = vmatpush3.bf16.msra.mxu1 %v843_v16  ;;  %v36_v4 = vld [vmem:[%s1397_s0 + $0xb0] sm:$0xff]  ;;  %v37_v6 = vld [vmem:[%s1397_s0 + $0xb8] sm:$0xff]  ;;  %v38_v8 = vld [vmem:[%s1397_s0 + $0xc0] sm:$0xff] }
  0x16   :  { %848 = vmatprep.subr.bf16.mxu0 %v847_v19  ;;  %864 = vmatprep.subr.bf16.mxu1 %v847_v19  ;;  %v68_v5 = vld [vmem:[%s1397_s0 + $0x1b0] sm:$0xff]  ;;  %v69_v7 = vld [vmem:[%s1397_s0 + $0x1b8] sm:$0xff]  ;;  %v70_v9 = vld [vmem:[%s1397_s0 + $0x1c0] sm:$0xff] }
  0x17   :  { %v39_v10 = vld [vmem:[%s1397_s0 + $0xc8] sm:$0xff]  ;;  %v40_v12 = vld [vmem:[%s1397_s0 + $0xd0] sm:$0xff]  ;;  %v41_v14 = vld [vmem:[%s1397_s0 + $0xd8] sm:$0xff] }
  0x18   :  { %v71_v11 = vld [vmem:[%s1397_s0 + $0x1c8] sm:$0xff]  ;;  %v72_v13 = vld [vmem:[%s1397_s0 + $0x1d0] sm:$0xff]  ;;  %v73_v15 = vld [vmem:[%s1397_s0 + $0x1d8] sm:$0xff] }
  0x19   :  { %850 = vmatpush3.bf16.msra.mxu0 %v847_v19  ;;  %872 = vmatpush3.bf16.msra.mxu1 %v847_v19  ;;  %v42_v16 = vld [vmem:[%s1397_s0 + $0xe0] sm:$0xff]  ;;  %v43_v18 = vld [vmem:[%s1397_s0 + $0xe8] sm:$0xff]  ;;  %v44_v20 = vld [vmem:[%s1397_s0 + $0xf0] sm:$0xff] }
  0x1a   :  { %852 = vmatprep.subr.bf16.mxu0 %v851_v22  ;;  %865 = vmatprep.subr.bf16.mxu1 %v851_v22  ;;  %v74_v17 = vld [vmem:[%s1397_s0 + $0x1e0] sm:$0xff]  ;;  %v75_v19 = vld [vmem:[%s1397_s0 + $0x1e8] sm:$0xff]  ;;  %v76_v21 = vld [vmem:[%s1397_s0 + $0x1f0] sm:$0xff] }
  0x1b   :  { %v77_v23 = vld [vmem:[%s1397_s0 + $0x1f8] sm:$0xff]  ;;  %v1138_v24 = vld [vmem:[%s1398_s2] ss:$0 sm:$0xff] }
  0x1d   :  { %854 = vmatpush3.bf16.msra.mxu0 %v851_v22  ;;  %873 = vmatpush3.bf16.msra.mxu1 %v851_v22  ;;  %v45_v22 = vld [vmem:[%s1397_s0 + $0xf8] sm:$0xff] }
  0x1e   :  { %856 = vmatprep.subr.bf16.mxu0 %v855_v25  ;;  %866 = vmatprep.subr.bf16.mxu1 %v855_v25 }
  0x21   :  { %858 = vmatpush3.bf16.msra.mxu0 %v855_v25  ;;  %874 = vmatpush3.bf16.msra.mxu1 %v855_v25 }
  0x24   :  { %732 = vmatmul.mubr.f32.vlgmr.msra.gmra.mrb[0].mxu0 %v15_v26  ;;  %780 = vmatmul.mubr.f32.vlgmr.msra.gmra.mrb[0].mxu1 %v47_v27 }
  0x25   :  { %734 = vmatprep.mubr.f32.mxu0 %v16_v28  ;;  %782 = vmatprep.mubr.f32.mxu1 %v48_v29 }
  0x28   :  { %735 = vmatmul.mubr.f32.gmra.mrb[2].mxu0 %v17_v30  ;;  %783 = vmatmul.mubr.f32.gmra.mrb[2].mxu1 %v49_v31 }
  0x29   :  { %737 = vmatprep.mubr.f32.mxu0 %v18_v32  ;;  %785 = vmatprep.mubr.f32.mxu1 %v50_v33 }
  0x2c   :  { %738 = vmatmul.mubr.f32.gmra.mrb[4].mxu0 %v19_v34  ;;  %786 = vmatmul.mubr.f32.gmra.mrb[4].mxu1 %v51_v35 }
  0x2d   :  { %740 = vmatprep.mubr.f32.mxu0 %v20_v36  ;;  %788 = vmatprep.mubr.f32.mxu1 %v52_v37 }
  0x30   :  { %741 = vmatmul.mubr.f32.gmra.mrb[6].mxu0 %v21_v38  ;;  %789 = vmatmul.mubr.f32.gmra.mrb[6].mxu1 %v53_v39 }
  0x31   :  { %743 = vmatprep.mubr.f32.mxu0 %v22_v40  ;;  %791 = vmatprep.mubr.f32.mxu1 %v54_v41 }
  0x34   :  { %744 = vmatmul.mubr.f32.gmra.mrb[8].mxu0 %v23_v42  ;;  %792 = vmatmul.mubr.f32.gmra.mrb[8].mxu1 %v55_v43 }
  0x35   :  { %746 = vmatprep.mubr.f32.mxu0 %v24_v44  ;;  %794 = vmatprep.mubr.f32.mxu1 %v56_v45 }
  0x38   :  { %747 = vmatmul.mubr.f32.gmra.mrb[10].mxu0 %v25_v46  ;;  %795 = vmatmul.mubr.f32.gmra.mrb[10].mxu1 %v57_v47 }
  0x39   :  { %749 = vmatprep.mubr.f32.mxu0 %v26_v48  ;;  %797 = vmatprep.mubr.f32.mxu1 %v58_v49 }
  0x3c   :  { %750 = vmatmul.mubr.f32.gmra.mrb[12].mxu0 %v27_v50  ;;  %798 = vmatmul.mubr.f32.gmra.mrb[12].mxu1 %v59_v51 }
  0x3d   :  { %752 = vmatprep.mubr.f32.mxu0 %v28_v52  ;;  %800 = vmatprep.mubr.f32.mxu1 %v60_v53 }
  0x40   :  { %753 = vmatmul.mubr.f32.gmra.mrb[14].mxu0 %v29_v54  ;;  %801 = vmatmul.mubr.f32.gmra.mrb[14].mxu1 %v61_v55 }
  0x41   :  { %755 = vmatprep.mubr.f32.mxu0 %v30_v56  ;;  %803 = vmatprep.mubr.f32.mxu1 %v62_v57 }
  0x44   :  { %756 = vmatmul.mubr.f32.gmra.mrb[16].mxu0 %v31_v58  ;;  %804 = vmatmul.mubr.f32.gmra.mrb[16].mxu1 %v63_v59 }
  0x45   :  { %758 = vmatprep.mubr.f32.mxu0 %v32_v60  ;;  %806 = vmatprep.mubr.f32.mxu1 %v64_v61 }
  0x48   :  { %759 = vmatmul.mubr.f32.gmra.mrb[18].mxu0 %v33_v62  ;;  %807 = vmatmul.mubr.f32.gmra.mrb[18].mxu1 %v65_v63 }
  0x49   :  { %761 = vmatprep.mubr.f32.mxu0 %v34_v0  ;;  %809 = vmatprep.mubr.f32.mxu1 %v66_v1 }
  0x4c   :  { %762 = vmatmul.mubr.f32.gmra.mrb[20].mxu0 %v35_v2  ;;  %810 = vmatmul.mubr.f32.gmra.mrb[20].mxu1 %v67_v3 }
  0x4d   :  { %764 = vmatprep.mubr.f32.mxu0 %v36_v4  ;;  %812 = vmatprep.mubr.f32.mxu1 %v68_v5 }
  0x50   :  { %765 = vmatmul.mubr.f32.gmra.mrb[22].mxu0 %v37_v6  ;;  %813 = vmatmul.mubr.f32.gmra.mrb[22].mxu1 %v69_v7 }
  0x51   :  { %767 = vmatprep.mubr.f32.mxu0 %v38_v8  ;;  %815 = vmatprep.mubr.f32.mxu1 %v70_v9 }
  0x54   :  { %768 = vmatmul.mubr.f32.gmra.mrb[24].mxu0 %v39_v10  ;;  %816 = vmatmul.mubr.f32.gmra.mrb[24].mxu1 %v71_v11 }
  0x55   :  { %770 = vmatprep.mubr.f32.mxu0 %v40_v12  ;;  %818 = vmatprep.mubr.f32.mxu1 %v72_v13 }
  0x58   :  { %771 = vmatmul.mubr.f32.gmra.mrb[26].mxu0 %v41_v14  ;;  %819 = vmatmul.mubr.f32.gmra.mrb[26].mxu1 %v73_v15 }
  0x59   :  { %773 = vmatprep.mubr.f32.mxu0 %v42_v16  ;;  %821 = vmatprep.mubr.f32.mxu1 %v74_v17 }
  0x5c   :  { %774 = vmatmul.mubr.f32.gmra.mrb[28].mxu0 %v43_v18  ;;  %822 = vmatmul.mubr.f32.gmra.mrb[28].mxu1 %v75_v19 }
  0x5d   :  { %776 = vmatprep.mubr.f32.mxu0 %v44_v20  ;;  %824 = vmatprep.mubr.f32.mxu1 %v76_v21 }
  0x60   :  { %777 = vmatmul.mubr.f32.gmra.mrb[30].mxu0 %v45_v22  ;;  %825 = vmatmul.mubr.f32.gmra.mrb[30].mxu1 %v77_v23 }
  0xf7   :  { %v733_v25 = vpop.f32.mrb[0].mxu0  ;;  %v781_v26 = vpop.f32.mrb[0].mxu1 }
  0xf8   :  { %v173_v27 = vadd.f32 %v733_v25, %v1138_v24  ;;  %v333_v28 = vadd.f32 %v781_v26, %v1138_v24  ;;  %v167_v29 = vpop.f32.mrb[1].mxu0  ;;  %v327_v30 = vpop.f32.mrb[1].mxu1 }
  0xf9   :  { %v168_v31 = vadd.f32 %v1138_v24, %v167_v29  ;;  %v328_v32 = vadd.f32 %v1138_v24, %v327_v30 }
  0xfa   :  { %v487_v33 = vmax.f32 %v173_v27, 0.0  ;;  %v519_v34 = vmax.f32 %v333_v28, 0.0 }
  0xfb   :  { %v486_v35 = vmax.f32 %v168_v31, 0.0  ;;  %v518_v36 = vmax.f32 %v328_v32, 0.0  ;;  %v736_v37 = vpop.f32.mrb[2].mxu0  ;;  %v784_v38 = vpop.f32.mrb[2].mxu1 }
  0xfc   :  { %551 = vst [vmem:[%s1399_s3 + $0x8] sm:$0xff] %v487_v33  ;;  %583 = vst [vmem:[%s1399_s3 + $0x108] sm:$0xff] %v519_v34  ;;  %v183_v39 = vadd.f32 %v736_v37, %v1138_v24  ;;  %v343_v40 = vadd.f32 %v784_v38, %v1138_v24  ;;  %v177_v41 = vpop.f32.mrb[3].mxu0  ;;  %v337_v42 = vpop.f32.mrb[3].mxu1 }
  0xfd   :  { %550 = vst [vmem:[%s1399_s3] sm:$0xff] %v486_v35  ;;  %582 = vst [vmem:[%s1399_s3 + $0x100] sm:$0xff] %v518_v36  ;;  %v178_v43 = vadd.f32 %v1138_v24, %v177_v41  ;;  %v338_v44 = vadd.f32 %v1138_v24, %v337_v42 }
  0xfe   :  { %v489_v45 = vmax.f32 %v183_v39, 0.0  ;;  %v521_v46 = vmax.f32 %v343_v40, 0.0 }
  0xff   :  { %v488_v47 = vmax.f32 %v178_v43, 0.0  ;;  %v520_v48 = vmax.f32 %v338_v44, 0.0  ;;  %v739_v49 = vpop.f32.mrb[4].mxu0  ;;  %v787_v50 = vpop.f32.mrb[4].mxu1 }
 0x100   :  { %553 = vst [vmem:[%s1399_s3 + $0x18] sm:$0xff] %v489_v45  ;;  %585 = vst [vmem:[%s1399_s3 + $0x118] sm:$0xff] %v521_v46  ;;  %v193_v51 = vadd.f32 %v739_v49, %v1138_v24  ;;  %v353_v52 = vadd.f32 %v787_v50, %v1138_v24  ;;  %v187_v53 = vpop.f32.mrb[5].mxu0  ;;  %v347_v54 = vpop.f32.mrb[5].mxu1 }
 0x101   :  { %552 = vst [vmem:[%s1399_s3 + $0x10] sm:$0xff] %v488_v47  ;;  %584 = vst [vmem:[%s1399_s3 + $0x110] sm:$0xff] %v520_v48  ;;  %v188_v55 = vadd.f32 %v1138_v24, %v187_v53  ;;  %v348_v56 = vadd.f32 %v1138_v24, %v347_v54 }
 0x102   :  { %v491_v57 = vmax.f32 %v193_v51, 0.0  ;;  %v523_v58 = vmax.f32 %v353_v52, 0.0 }
 0x103   :  { %v490_v59 = vmax.f32 %v188_v55, 0.0  ;;  %v522_v60 = vmax.f32 %v348_v56, 0.0  ;;  %v742_v61 = vpop.f32.mrb[6].mxu0  ;;  %v790_v62 = vpop.f32.mrb[6].mxu1 }
 0x104   :  { %555 = vst [vmem:[%s1399_s3 + $0x28] sm:$0xff] %v491_v57  ;;  %587 = vst [vmem:[%s1399_s3 + $0x128] sm:$0xff] %v523_v58  ;;  %v203_v63 = vadd.f32 %v742_v61, %v1138_v24  ;;  %v363_v0 = vadd.f32 %v790_v62, %v1138_v24  ;;  %v197_v1 = vpop.f32.mrb[7].mxu0  ;;  %v357_v2 = vpop.f32.mrb[7].mxu1 }
 0x105   :  { %554 = vst [vmem:[%s1399_s3 + $0x20] sm:$0xff] %v490_v59  ;;  %586 = vst [vmem:[%s1399_s3 + $0x120] sm:$0xff] %v522_v60  ;;  %v198_v3 = vadd.f32 %v1138_v24, %v197_v1  ;;  %v358_v4 = vadd.f32 %v1138_v24, %v357_v2 }
 0x106   :  { %v493_v5 = vmax.f32 %v203_v63, 0.0  ;;  %v525_v6 = vmax.f32 %v363_v0, 0.0 }
 0x107   :  { %v492_v7 = vmax.f32 %v198_v3, 0.0  ;;  %v524_v8 = vmax.f32 %v358_v4, 0.0  ;;  %v745_v9 = vpop.f32.mrb[8].mxu0  ;;  %v793_v10 = vpop.f32.mrb[8].mxu1 }
 0x108   :  { %557 = vst [vmem:[%s1399_s3 + $0x38] sm:$0xff] %v493_v5  ;;  %589 = vst [vmem:[%s1399_s3 + $0x138] sm:$0xff] %v525_v6  ;;  %v213_v11 = vadd.f32 %v745_v9, %v1138_v24  ;;  %v373_v12 = vadd.f32 %v793_v10, %v1138_v24  ;;  %v207_v13 = vpop.f32.mrb[9].mxu0  ;;  %v367_v14 = vpop.f32.mrb[9].mxu1 }
 0x109   :  { %556 = vst [vmem:[%s1399_s3 + $0x30] sm:$0xff] %v492_v7  ;;  %588 = vst [vmem:[%s1399_s3 + $0x130] sm:$0xff] %v524_v8  ;;  %v208_v15 = vadd.f32 %v1138_v24, %v207_v13  ;;  %v368_v16 = vadd.f32 %v1138_v24, %v367_v14 }
 0x10a   :  { %v495_v17 = vmax.f32 %v213_v11, 0.0  ;;  %v527_v18 = vmax.f32 %v373_v12, 0.0 }
 0x10b   :  { %v494_v19 = vmax.f32 %v208_v15, 0.0  ;;  %v526_v20 = vmax.f32 %v368_v16, 0.0  ;;  %v748_v21 = vpop.f32.mrb[10].mxu0  ;;  %v796_v22 = vpop.f32.mrb[10].mxu1 }
 0x10c   :  { %559 = vst [vmem:[%s1399_s3 + $0x48] sm:$0xff] %v495_v17  ;;  %591 = vst [vmem:[%s1399_s3 + $0x148] sm:$0xff] %v527_v18  ;;  %v223_v23 = vadd.f32 %v748_v21, %v1138_v24  ;;  %v383_v25 = vadd.f32 %v796_v22, %v1138_v24  ;;  %v217_v26 = vpop.f32.mrb[11].mxu0  ;;  %v377_v27 = vpop.f32.mrb[11].mxu1 }
 0x10d   :  { %558 = vst [vmem:[%s1399_s3 + $0x40] sm:$0xff] %v494_v19  ;;  %590 = vst [vmem:[%s1399_s3 + $0x140] sm:$0xff] %v526_v20  ;;  %v218_v28 = vadd.f32 %v1138_v24, %v217_v26  ;;  %v378_v29 = vadd.f32 %v1138_v24, %v377_v27 }
 0x10e   :  { %v497_v30 = vmax.f32 %v223_v23, 0.0  ;;  %v529_v31 = vmax.f32 %v383_v25, 0.0 }
 0x10f   :  { %v496_v32 = vmax.f32 %v218_v28, 0.0  ;;  %v528_v33 = vmax.f32 %v378_v29, 0.0  ;;  %v751_v34 = vpop.f32.mrb[12].mxu0  ;;  %v799_v35 = vpop.f32.mrb[12].mxu1 }
 0x110   :  { %561 = vst [vmem:[%s1399_s3 + $0x58] sm:$0xff] %v497_v30  ;;  %593 = vst [vmem:[%s1399_s3 + $0x158] sm:$0xff] %v529_v31  ;;  %v233_v36 = vadd.f32 %v751_v34, %v1138_v24  ;;  %v393_v37 = vadd.f32 %v799_v35, %v1138_v24  ;;  %v227_v38 = vpop.f32.mrb[13].mxu0  ;;  %v387_v39 = vpop.f32.mrb[13].mxu1 }
 0x111   :  { %560 = vst [vmem:[%s1399_s3 + $0x50] sm:$0xff] %v496_v32  ;;  %592 = vst [vmem:[%s1399_s3 + $0x150] sm:$0xff] %v528_v33  ;;  %v228_v40 = vadd.f32 %v1138_v24, %v227_v38  ;;  %v388_v41 = vadd.f32 %v1138_v24, %v387_v39 }
 0x112   :  { %v499_v42 = vmax.f32 %v233_v36, 0.0  ;;  %v531_v43 = vmax.f32 %v393_v37, 0.0 }
 0x113   :  { %v498_v44 = vmax.f32 %v228_v40, 0.0  ;;  %v530_v45 = vmax.f32 %v388_v41, 0.0  ;;  %v754_v46 = vpop.f32.mrb[14].mxu0  ;;  %v802_v47 = vpop.f32.mrb[14].mxu1 }
 0x114   :  { %563 = vst [vmem:[%s1399_s3 + $0x68] sm:$0xff] %v499_v42  ;;  %595 = vst [vmem:[%s1399_s3 + $0x168] sm:$0xff] %v531_v43  ;;  %v243_v48 = vadd.f32 %v754_v46, %v1138_v24  ;;  %v403_v49 = vadd.f32 %v802_v47, %v1138_v24  ;;  %v237_v50 = vpop.f32.mrb[15].mxu0  ;;  %v397_v51 = vpop.f32.mrb[15].mxu1 }
 0x115   :  { %562 = vst [vmem:[%s1399_s3 + $0x60] sm:$0xff] %v498_v44  ;;  %594 = vst [vmem:[%s1399_s3 + $0x160] sm:$0xff] %v530_v45  ;;  %v238_v52 = vadd.f32 %v1138_v24, %v237_v50  ;;  %v398_v53 = vadd.f32 %v1138_v24, %v397_v51 }
 0x116   :  { %v501_v54 = vmax.f32 %v243_v48, 0.0  ;;  %v533_v55 = vmax.f32 %v403_v49, 0.0 }
 0x117   :  { %v500_v56 = vmax.f32 %v238_v52, 0.0  ;;  %v532_v57 = vmax.f32 %v398_v53, 0.0  ;;  %v757_v58 = vpop.f32.mrb[16].mxu0  ;;  %v805_v59 = vpop.f32.mrb[16].mxu1 }
 0x118   :  { %565 = vst [vmem:[%s1399_s3 + $0x78] sm:$0xff] %v501_v54  ;;  %597 = vst [vmem:[%s1399_s3 + $0x178] sm:$0xff] %v533_v55  ;;  %v253_v60 = vadd.f32 %v757_v58, %v1138_v24  ;;  %v413_v61 = vadd.f32 %v805_v59, %v1138_v24  ;;  %v247_v62 = vpop.f32.mrb[17].mxu0  ;;  %v407_v63 = vpop.f32.mrb[17].mxu1 }
 0x119   :  { %564 = vst [vmem:[%s1399_s3 + $0x70] sm:$0xff] %v500_v56  ;;  %596 = vst [vmem:[%s1399_s3 + $0x170] sm:$0xff] %v532_v57  ;;  %v248_v0 = vadd.f32 %v1138_v24, %v247_v62  ;;  %v408_v1 = vadd.f32 %v1138_v24, %v407_v63 }
 0x11a   :  { %v503_v2 = vmax.f32 %v253_v60, 0.0  ;;  %v535_v3 = vmax.f32 %v413_v61, 0.0 }
 0x11b   :  { %v502_v4 = vmax.f32 %v248_v0, 0.0  ;;  %v534_v5 = vmax.f32 %v408_v1, 0.0  ;;  %v760_v6 = vpop.f32.mrb[18].mxu0  ;;  %v808_v7 = vpop.f32.mrb[18].mxu1 }
 0x11c   :  { %567 = vst [vmem:[%s1399_s3 + $0x88] sm:$0xff] %v503_v2  ;;  %599 = vst [vmem:[%s1399_s3 + $0x188] sm:$0xff] %v535_v3  ;;  %v263_v8 = vadd.f32 %v760_v6, %v1138_v24  ;;  %v423_v9 = vadd.f32 %v808_v7, %v1138_v24  ;;  %v257_v10 = vpop.f32.mrb[19].mxu0  ;;  %v417_v11 = vpop.f32.mrb[19].mxu1 }
 0x11d   :  { %566 = vst [vmem:[%s1399_s3 + $0x80] sm:$0xff] %v502_v4  ;;  %598 = vst [vmem:[%s1399_s3 + $0x180] sm:$0xff] %v534_v5  ;;  %v258_v12 = vadd.f32 %v1138_v24, %v257_v10  ;;  %v418_v13 = vadd.f32 %v1138_v24, %v417_v11 }
 0x11e   :  { %v505_v14 = vmax.f32 %v263_v8, 0.0  ;;  %v537_v15 = vmax.f32 %v423_v9, 0.0 }
 0x11f   :  { %v504_v16 = vmax.f32 %v258_v12, 0.0  ;;  %v536_v17 = vmax.f32 %v418_v13, 0.0  ;;  %v763_v18 = vpop.f32.mrb[20].mxu0  ;;  %v811_v19 = vpop.f32.mrb[20].mxu1 }
 0x120   :  { %569 = vst [vmem:[%s1399_s3 + $0x98] sm:$0xff] %v505_v14  ;;  %601 = vst [vmem:[%s1399_s3 + $0x198] sm:$0xff] %v537_v15  ;;  %v273_v20 = vadd.f32 %v763_v18, %v1138_v24  ;;  %v433_v21 = vadd.f32 %v811_v19, %v1138_v24  ;;  %v267_v22 = vpop.f32.mrb[21].mxu0  ;;  %v427_v23 = vpop.f32.mrb[21].mxu1 }
 0x121   :  { %568 = vst [vmem:[%s1399_s3 + $0x90] sm:$0xff] %v504_v16  ;;  %600 = vst [vmem:[%s1399_s3 + $0x190] sm:$0xff] %v536_v17  ;;  %v268_v25 = vadd.f32 %v1138_v24, %v267_v22  ;;  %v428_v26 = vadd.f32 %v1138_v24, %v427_v23 }
 0x122   :  { %v507_v27 = vmax.f32 %v273_v20, 0.0  ;;  %v539_v28 = vmax.f32 %v433_v21, 0.0 }
 0x123   :  { %v506_v29 = vmax.f32 %v268_v25, 0.0  ;;  %v538_v30 = vmax.f32 %v428_v26, 0.0  ;;  %v766_v31 = vpop.f32.mrb[22].mxu0  ;;  %v814_v32 = vpop.f32.mrb[22].mxu1 }
 0x124   :  { %571 = vst [vmem:[%s1399_s3 + $0xa8] sm:$0xff] %v507_v27  ;;  %603 = vst [vmem:[%s1399_s3 + $0x1a8] sm:$0xff] %v539_v28  ;;  %v283_v33 = vadd.f32 %v766_v31, %v1138_v24  ;;  %v443_v34 = vadd.f32 %v814_v32, %v1138_v24  ;;  %v277_v35 = vpop.f32.mrb[23].mxu0  ;;  %v437_v36 = vpop.f32.mrb[23].mxu1 }
 0x125   :  { %570 = vst [vmem:[%s1399_s3 + $0xa0] sm:$0xff] %v506_v29  ;;  %602 = vst [vmem:[%s1399_s3 + $0x1a0] sm:$0xff] %v538_v30  ;;  %v278_v37 = vadd.f32 %v1138_v24, %v277_v35  ;;  %v438_v38 = vadd.f32 %v1138_v24, %v437_v36 }
 0x126   :  { %v509_v39 = vmax.f32 %v283_v33, 0.0  ;;  %v541_v40 = vmax.f32 %v443_v34, 0.0 }
 0x127   :  { %v508_v41 = vmax.f32 %v278_v37, 0.0  ;;  %v540_v42 = vmax.f32 %v438_v38, 0.0  ;;  %v769_v43 = vpop.f32.mrb[24].mxu0  ;;  %v817_v44 = vpop.f32.mrb[24].mxu1 }
 0x128   :  { %573 = vst [vmem:[%s1399_s3 + $0xb8] sm:$0xff] %v509_v39  ;;  %605 = vst [vmem:[%s1399_s3 + $0x1b8] sm:$0xff] %v541_v40  ;;  %v293_v45 = vadd.f32 %v769_v43, %v1138_v24  ;;  %v453_v46 = vadd.f32 %v817_v44, %v1138_v24  ;;  %v287_v47 = vpop.f32.mrb[25].mxu0  ;;  %v447_v48 = vpop.f32.mrb[25].mxu1 }
 0x129   :  { %572 = vst [vmem:[%s1399_s3 + $0xb0] sm:$0xff] %v508_v41  ;;  %604 = vst [vmem:[%s1399_s3 + $0x1b0] sm:$0xff] %v540_v42  ;;  %v288_v49 = vadd.f32 %v1138_v24, %v287_v47  ;;  %v448_v50 = vadd.f32 %v1138_v24, %v447_v48 }
 0x12a   :  { %v511_v51 = vmax.f32 %v293_v45, 0.0  ;;  %v543_v52 = vmax.f32 %v453_v46, 0.0 }
 0x12b   :  { %v510_v53 = vmax.f32 %v288_v49, 0.0  ;;  %v542_v54 = vmax.f32 %v448_v50, 0.0  ;;  %v772_v55 = vpop.f32.mrb[26].mxu0  ;;  %v820_v56 = vpop.f32.mrb[26].mxu1 }
 0x12c   :  { %575 = vst [vmem:[%s1399_s3 + $0xc8] sm:$0xff] %v511_v51  ;;  %607 = vst [vmem:[%s1399_s3 + $0x1c8] sm:$0xff] %v543_v52  ;;  %v303_v57 = vadd.f32 %v772_v55, %v1138_v24  ;;  %v463_v58 = vadd.f32 %v820_v56, %v1138_v24  ;;  %v297_v59 = vpop.f32.mrb[27].mxu0  ;;  %v457_v60 = vpop.f32.mrb[27].mxu1 }
 0x12d   :  { %574 = vst [vmem:[%s1399_s3 + $0xc0] sm:$0xff] %v510_v53  ;;  %606 = vst [vmem:[%s1399_s3 + $0x1c0] sm:$0xff] %v542_v54  ;;  %v298_v61 = vadd.f32 %v1138_v24, %v297_v59  ;;  %v458_v62 = vadd.f32 %v1138_v24, %v457_v60 }
 0x12e   :  { %v513_v63 = vmax.f32 %v303_v57, 0.0  ;;  %v545_v0 = vmax.f32 %v463_v58, 0.0 }
 0x12f   :  { %v512_v1 = vmax.f32 %v298_v61, 0.0  ;;  %v544_v2 = vmax.f32 %v458_v62, 0.0  ;;  %v775_v3 = vpop.f32.mrb[28].mxu0  ;;  %v823_v4 = vpop.f32.mrb[28].mxu1 }
 0x130   :  { %577 = vst [vmem:[%s1399_s3 + $0xd8] sm:$0xff] %v513_v63  ;;  %609 = vst [vmem:[%s1399_s3 + $0x1d8] sm:$0xff] %v545_v0  ;;  %v313_v5 = vadd.f32 %v775_v3, %v1138_v24  ;;  %v473_v6 = vadd.f32 %v823_v4, %v1138_v24  ;;  %v307_v7 = vpop.f32.mrb[29].mxu0  ;;  %v467_v8 = vpop.f32.mrb[29].mxu1 }
 0x131   :  { %576 = vst [vmem:[%s1399_s3 + $0xd0] sm:$0xff] %v512_v1  ;;  %608 = vst [vmem:[%s1399_s3 + $0x1d0] sm:$0xff] %v544_v2  ;;  %v308_v9 = vadd.f32 %v1138_v24, %v307_v7  ;;  %v468_v10 = vadd.f32 %v1138_v24, %v467_v8 }
 0x132   :  { %v515_v11 = vmax.f32 %v313_v5, 0.0  ;;  %v547_v12 = vmax.f32 %v473_v6, 0.0 }
 0x133   :  { %v514_v13 = vmax.f32 %v308_v9, 0.0  ;;  %v546_v14 = vmax.f32 %v468_v10, 0.0  ;;  %v778_v15 = vpop.f32.mrb[30].mxu0  ;;  %v826_v16 = vpop.f32.mrb[30].mxu1 }
 0x134   :  { %579 = vst [vmem:[%s1399_s3 + $0xe8] sm:$0xff] %v515_v11  ;;  %611 = vst [vmem:[%s1399_s3 + $0x1e8] sm:$0xff] %v547_v12  ;;  %v323_v17 = vadd.f32 %v778_v15, %v1138_v24  ;;  %v483_v18 = vadd.f32 %v826_v16, %v1138_v24  ;;  %v317_v19 = vpop.f32.mrb[31].mxu0  ;;  %v477_v20 = vpop.f32.mrb[31].mxu1 }
 0x135   :  { %578 = vst [vmem:[%s1399_s3 + $0xe0] sm:$0xff] %v514_v13  ;;  %610 = vst [vmem:[%s1399_s3 + $0x1e0] sm:$0xff] %v546_v14  ;;  %v318_v21 = vadd.f32 %v1138_v24, %v317_v19  ;;  %v478_v22 = vadd.f32 %v1138_v24, %v477_v20 }
 0x136   :  { %v517_v23 = vmax.f32 %v323_v17, 0.0  ;;  %v549_v25 = vmax.f32 %v483_v18, 0.0 }
 0x137   :  { %v516_v26 = vmax.f32 %v318_v21, 0.0  ;;  %v548_v27 = vmax.f32 %v478_v22, 0.0 }
 0x138   :  { %581 = vst [vmem:[%s1399_s3 + $0xf8] sm:$0xff] %v517_v23  ;;  %613 = vst [vmem:[%s1399_s3 + $0x1f8] sm:$0xff] %v549_v25 }
 0x139   :  { %580 = vst [vmem:[%s1399_s3 + $0xf0] sm:$0xff] %v516_v26  ;;  %612 = vst [vmem:[%s1399_s3 + $0x1f0] sm:$0xff] %v548_v27 }

// kernel: inverted_residual.8
= control target key start
LH: loop header
LB: loop body
LE: loop exit
PB: predicated region body
PF: predicated region fallthrough
CT: control target
= control target key end

     0   :  { %s791_s12 = smov 0   ;;  %s1001_s0 = inlined_call_operand.vmem [shape: f32[2,16,16,128], index: 0, kind: input, shape index: {}]   ;;  %s1002_s1 = inlined_call_operand.vmem [shape: f32[9,128], index: 1, kind: input, shape index: {}]   ;;  %s1003_s2 = inlined_call_operand.vmem [shape: f32[1,128], index: 2, kind: input, shape index: {}]   ;;  %s1004_s3 = inlined_call_operand.vmem [shape: f32[2,8,8,128], index: 3, kind: output, shape index: {}]  }
   0x1 LB: > { %s738_s13 = sadd.s32 4294967295, %s768_s12   ;;  %p742_p0 = scmp.ge.s32.totalorder %s768_s12, 1  ;;  %s768_s12 = sphi %s791_s12, %s13_s12  }
   0x2   : > { %p137_p1 = scmp.lt.s32.totalorder %s768_s12, 3 }
   0x4   : > { %p138_p2 = pnand %p742_p0, %p137_p1 }
   0x5   : > { %p801_p3 = scmp.lt.s32.totalorder (!%p138_p2), %s738_s13, 1  ;;  %v770_v0 = vmov (!%p138_p2), 0.0   ;;  %v307_v1 = vlaneseq (!%p138_p2)  ;;  %v831_v12 = vld [vmem:[%s1002_s1] sm:$0xff] (!%p138_p2)  ;;  %v879_v49 = vld [vmem:[%s1002_s1 + $0x8] ss:$0 sm:$0xff] (!%p138_p2) }
   0x6   : > { %141 = sbr.rel (%p138_p2) target bundleno = 88 (0x58), region = 32  ;;  %171 = vst [vmem:[#allocation2] sm:$0xff] (!%p138_p2), %v770_v0  ;;  %172 = vst [vmem:[#allocation2 + $0x8] sm:$0xff] (!%p138_p2), %v770_v0 }
   0x7   : > { %173 = vst [vmem:[#allocation2 + $0x10] sm:$0x3] (!%p138_p2), %v770_v0  ;;  %174 = vst [vmem:[#allocation2 + $0x18] sm:$0xff] (!%p138_p2), %v770_v0  ;;  %v817_v2 = vshrl.u32 (!%p138_p2), %v307_v1, 7 }
   0x8   : > { %175 = vst [vmem:[#allocation2 + $0x20] sm:$0xff] (!%p138_p2), %v770_v0  ;;  %176 = vst [vmem:[#allocation2 + $0x28] sm:$0x3] (!%p138_p2), %v770_v0 }
   0x9   : > { %177 = vst [vmem:[#allocation2 + $0x30] sm:$0xff] (!%p138_p2), %v770_v0  ;;  %178 = vst [vmem:[#allocation2 + $0x38] sm:$0xff] (!%p138_p2), %v770_v0  ;;  %v309_v16 = vsub.s32 (!%p138_p2), 0, %v817_v2  ;;  %v345_v20 = vsub.s32 (!%p138_p2), 1, %v817_v2  ;;  %v381_v21 = vsub.s32 (!%p138_p2), 2, %v817_v2  ;;  %v416_v28 = vsub.s32 (!%p138_p2), 3, %v817_v2 }
   0xa   : > { %179 = vst [vmem:[#allocation2 + $0x40] sm:$0x3] (!%p138_p2), %v770_v0  ;;  %180 = vst [vmem:[#allocation2 + $0x48] sm:$0xff] (!%p138_p2), %v770_v0  ;;  %v452_v33 = vsub.s32 (!%p138_p2), 4, %v817_v2  ;;  %v488_v34 = vsub.s32 (!%p138_p2), 5, %v817_v2  ;;  %v524_v40 = vsub.s32 (!%p138_p2), 6, %v817_v2 }
   0xb   : > { %181 = vst [vmem:[#allocation2 + $0x50] sm:$0xff] (!%p138_p2), %v770_v0  ;;  %182 = vst [vmem:[#allocation2 + $0x58] sm:$0x3] (!%p138_p2), %v770_v0  ;;  %v853_v32 = vrot.slane (!%p138_p2), %v831_v12, %v309_v16  ;;  %v861_v38 = vrot.slane (!%p138_p2), %v831_v12, %v345_v20  ;;  %v864_v39 = vrot.slane (!%p138_p2), %v831_v12, %v381_v21  ;;  %v560_v41 = vsub.s32 (!%p138_p2), 7, %v817_v2 }
   0xc   : > { %183 = vst [vmem:[#allocation2 + $0x60] sm:$0xff] (!%p138_p2), %v770_v0  ;;  %184 = vst [vmem:[#allocation2 + $0x68] sm:$0xff] (!%p138_p2), %v770_v0  ;;  %v874_v48 = vrot.slane (!%p138_p2), %v831_v12, %v416_v28  ;;  %v883_v54 = vrot.slane (!%p138_p2), %v831_v12, %v452_v33  ;;  %v886_v55 = vrot.slane (!%p138_p2), %v831_v12, %v488_v34 }
   0xd   : > { %185 = vst [vmem:[#allocation2 + $0x70] sm:$0x3] %v770_v0  ;;  %186 = vst [vmem:[#allocation2 + $0x78] sm:$0xff] %v770_v0  ;;  %s1007_s13 = smov (!%p801_p3, %s738_s13), 1  ;;  %v292_v47 = vld [vmem:[#allocation2] ss:$2 sm:$0xff]  ;;  %v891_v61 = vrot.slane %v831_v12, %v524_v40  ;;  %v894_v62 = vrot.slane %v831_v12, %v560_v41 }
   0xe   : > { %187 = vst [vmem:[#allocation2 + $0x80] sm:$0xff] %v770_v0  ;;  %188 = vst [vmem:[#allocation2 + $0x88] sm:$0x3] %v770_v0  ;;  %s751_s15 = sshll.u32 %s1007_s13, 8  ;;  %v311_v50 = vmul.f32 %v853_v32, %v292_v47  ;;  %v328_v51 = vld [vmem:[#allocation2 + $0x1] ss:$2 sm:$0xff] }
   0xf   : > { %189 = vst [vmem:[#allocation2 + $0x90] sm:$0xff] %v770_v0  ;;  %190 = vst [vmem:[#allocation2 + $0x98] sm:$0xff] %v770_v0  ;;  %s815_s18 = scalar_lea.vmem %s1001_s0, %s751_s15  ;;  %v364_v52 = vld [vmem:[#allocation2 + $0x2] ss:$2 sm:$0xff]  ;;  %v347_v56 = vmul.f32 %v861_v38, %v328_v51  ;;  %s752_s23 = sshll.u32 %s1007_s13, 6 }
  0x10   : > { %191 = vst [vmem:[#allocation2 + $0xa0] sm:$0x3] %v770_v0  ;;  %192 = vst [vmem:[#allocation2 + $0xa8] sm:$0xff] %v770_v0  ;;  %v225_v3 = vld [vmem:[%s815_s18] sm:$0xff]  ;;  %v226_v4 = vld [vmem:[%s815_s18 + $0x8] sm:$0xff]  ;;  %v383_v57 = vmul.f32 %v864_v39, %v364_v52  ;;  %s945_s28 = scalar_lea.vmem %s1004_s3, %s752_s23 }
  0x11   : > { %193 = vst [vmem:[#allocation2 + $0xb0] sm:$0xff] %v770_v0  ;;  %194 = vst [vmem:[#allocation2 + $0xb8] sm:$0x3] %v770_v0  ;;  %v227_v5 = vld [vmem:[%s815_s18 + $0x10] sm:$0xff]  ;;  %v228_v6 = vld [vmem:[%s815_s18 + $0x18] sm:$0xff]  ;;  %v355_v2 = vadd.f32 %v347_v56, %v311_v50 }
  0x12   : > { %195 = vst [vmem:[#allocation2 + $0xc0] sm:$0xff] %v770_v0  ;;  %196 = vst [vmem:[#allocation2 + $0xc8] sm:$0xff] %v770_v0  ;;  %v231_v7 = vld [vmem:[%s815_s18 + $0x30] sm:$0xff]  ;;  %v232_v8 = vld [vmem:[%s815_s18 + $0x38] sm:$0xff] }
  0x13   : > { %197 = vst [vmem:[#allocation2 + $0xd0] sm:$0x3] %v770_v0  ;;  %198 = vst [vmem:[#allocation2 + $0xd8] sm:$0xff] %v770_v0  ;;  %v235_v9 = vld [vmem:[%s815_s18 + $0x50] sm:$0xff]  ;;  %v236_v10 = vld [vmem:[%s815_s18 + $0x58] sm:$0xff] }
  0x14   : > { %199 = vst [vmem:[#allocation2 + $0xe0] sm:$0xff] %v770_v0  ;;  %200 = vst [vmem:[#allocation2 + $0xe8] sm:$0x3] %v770_v0  ;;  %v239_v11 = vld [vmem:[%s815_s18 + $0x70] sm:$0xff]  ;;  %v240_v13 = vld [vmem:[%s815_s18 + $0x78] sm:$0xff] }
  0x15   : > { %201 = vst [vmem:[#allocation2 + $0xf0] sm:$0xff] %v770_v0  ;;  %202 = vst [vmem:[#allocation2 + $0xf8] sm:$0xff] %v770_v0  ;;  %v243_v14 = vld [vmem:[%s815_s18 + $0x90] sm:$0xff]  ;;  %v244_v15 = vld [vmem:[%s815_s18 + $0x98] sm:$0xff] }
  0x16   : > { %203 = vst [vmem:[#allocation2 + $0x100] sm:$0x3] %v770_v0  ;;  %204 = vst [vmem:[#allocation2 + $0x108] sm:$0xff] %v770_v0  ;;  %v247_v17 = vld [vmem:[%s815_s18 + $0xb0] sm:$0xff]  ;;  %v248_v18 = vld [vmem:[%s815_s18 + $0xb8] sm:$0xff] }
  0x17   : > { %205 = vst [vmem:[#allocation2 + $0x110] sm:$0xff] %v770_v0  ;;  %206 = vst [vmem:[#allocation2 + $0x118] sm:$0x3] %v770_v0  ;;  %v251_v19 = vld [vmem:[%s815_s18 + $0xd0] sm:$0xff]  ;;  %v252_v22 = vld [vmem:[%s815_s18 + $0xd8] sm:$0xff] }
  0x18   : > { %207 = vst [vmem:[#allocation2 + $0x120] sm:$0xff] %v770_v0  ;;  %208 = vst [vmem:[#allocation2 + $0x128] sm:$0xff] %v770_v0  ;;  %v229_v23 = vld [vmem:[%s815_s18 + $0x20] sm:$0xff]  ;;  %v230_v24 = vld [vmem:[%s815_s18 + $0x28] sm:$0xff] }
  0x19   : > { %209 = vst [vmem:[#allocation2 + $0x130] sm:$0x3] %v770_v0  ;;  %210 = vst [vmem:[#allocation2 + $0x138] sm:$0xff] %v770_v0  ;;  %v233_v25 = vld [vmem:[%s815_s18 + $0x40] sm:$0xff]  ;;  %v234_v26 = vld [vmem:[%s815_s18 + $0x48] sm:$0xff] }
  0x1a   : > { %211 = vst [vmem:[#allocation2 + $0x140] sm:$0xff] %v770_v0  ;;  %212 = vst [vmem:[#allocation2 + $0x148] sm:$0x3] %v770_v0  ;;  %v237_v27 = vld [vmem:[%s815_s18 + $0x60] sm:$0xff]  ;;  %v238_v29 = vld [vmem:[%s815_s18 + $0x68] sm:$0xff] }
  0x1b   : > { %213 = vst [vmem:[#allocation2 + $0x150] sm:$0xff] %v770_v0  ;;  %214 = vst [vmem:[#allocation2 + $0x158] sm:$0xff] %v770_v0  ;;  %v241_v30 = vld [vmem:[%s815_s18 + $0x80] sm:$0xff]  ;;  %v242_v31 = vld [vmem:[%s815_s18 + $0x88] sm:$0xff] }
  0x1c   : > { %215 = vst [vmem:[#allocation2 + $0x160] sm:$0x3] %v770_v0  ;;  %216 = vst [vmem:[#allocation2 + $0x168] sm:$0xff] %v770_v0  ;;  %v245_v35 = vld [vmem:[%s815_s18 + $0xa0] sm:$0xff]  ;;  %v246_v36 = vld [vmem:[%s815_s18 + $0xa8] sm:$0xff] }
  0x1d   : > { %217 = vst [vmem:[#allocation2 + $0x170] sm:$0xff] %v770_v0  ;;  %218 = vst [vmem:[#allocation2 + $0x178] sm:$0x3] %v770_v0  ;;  %v249_v37 = vld [vmem:[%s815_s18 + $0xc0] sm:$0xff]  ;;  %v250_v42 = vld [vmem:[%s815_s18 + $0xc8] sm:$0xff] }
  0x1e   : > { %219 = vst [vmem:[#allocation2 + $0x180] sm:$0xff] %v770_v0  ;;  %220 = vst [vmem:[#allocation2 + $0x188] sm:$0xff] %v770_v0  ;;  %v253_v43 = vld [vmem:[%s815_s18 + $0xe0] sm:$0xff]  ;;  %v254_v44 = vld [vmem:[%s815_s18 + $0xe8] sm:$0xff] }
  0x1f   : > { %221 = vst [vmem:[#allocation2 + $0x190] sm:$0x3] %v770_v0  ;;  %258 = vst [vmem:[#allocation2 + $0x19] sm:$0xff] %v225_v3  ;;  %v255_v45 = vld [vmem:[%s815_s18 + $0xf0] sm:$0xff]  ;;  %v256_v46 = vld [vmem:[%s815_s18 + $0xf8] sm:$0xff] }
  0x20   : > { %259 = vst [vmem:[#allocation2 + $0x21] sm:$0xff] %v226_v4  ;;  %260 = vst [vmem:[#allocation2 + $0x31] sm:$0xff] %v227_v5 }
  0x21   : > { %261 = vst [vmem:[#allocation2 + $0x39] sm:$0xff] %v228_v6  ;;  %264 = vst [vmem:[#allocation2 + $0x61] sm:$0xff] %v231_v7 }
  0x22   : > { %265 = vst [vmem:[#allocation2 + $0x69] sm:$0xff] %v232_v8  ;;  %268 = vst [vmem:[#allocation2 + $0x91] sm:$0xff] %v235_v9 }
  0x23   : > { %269 = vst [vmem:[#allocation2 + $0x99] sm:$0xff] %v236_v10  ;;  %272 = vst [vmem:[#allocation2 + $0xc1] sm:$0xff] %v239_v11 }
  0x24   : > { %273 = vst [vmem:[#allocation2 + $0xc9] sm:$0xff] %v240_v13  ;;  %276 = vst [vmem:[#allocation2 + $0xf1] sm:$0xff] %v243_v14  ;;  %v391_v14 = vadd.f32 %v383_v57, %v355_v2 }
  0x25   : > { %277 = vst [vmem:[#allocation2 + $0xf9] sm:$0xff] %v244_v15  ;;  %280 = vst [vmem:[#allocation2 + $0x121] sm:$0xff] %v247_v17 }
  0x26   : > { %281 = vst [vmem:[#allocation2 + $0x129] sm:$0xff] %v248_v18  ;;  %284 = vst [vmem:[#allocation2 + $0x151] sm:$0xff] %v251_v19 }
  0x27   : > { %285 = vst [vmem:[#allocation2 + $0x159] sm:$0xff] %v252_v22  ;;  %262 = vst [vmem:[#allocation2 + $0x49] sm:$0xff] %v229_v23  ;;  %v399_v53 = vld [vmem:[#allocation2 + $0x18] ss:$2 sm:$0xff]  ;;  %v435_v58 = vld [vmem:[#allocation2 + $0x19] ss:$2 sm:$0xff] }
  0x28   : > { %263 = vst [vmem:[#allocation2 + $0x51] sm:$0xff] %v230_v24  ;;  %266 = vst [vmem:[#allocation2 + $0x79] sm:$0xff] %v233_v25  ;;  %v471_v59 = vld [vmem:[#allocation2 + $0x1a] ss:$2 sm:$0xff]  ;;  %v543_v63 = vld [vmem:[#allocation2 + $0x31] ss:$2 sm:$0xff]  ;;  %v418_v3 = vmul.f32 %v874_v48, %v399_v53  ;;  %v454_v8 = vmul.f32 %v883_v54, %v435_v58 }
  0x29   : > { %267 = vst [vmem:[#allocation2 + $0x81] sm:$0xff] %v234_v26  ;;  %270 = vst [vmem:[#allocation2 + $0xa9] sm:$0xff] %v237_v27  ;;  %v507_v60 = vld [vmem:[#allocation2 + $0x30] ss:$2 sm:$0xff]  ;;  %v330_v5 = vld [vmem:[#allocation2 + $0x31] ss:$2 sm:$0xff]  ;;  %v490_v9 = vmul.f32 %v886_v55, %v471_v59  ;;  %v562_v16 = vmul.f32 %v894_v62, %v543_v63 }
  0x2a   : > { %271 = vst [vmem:[#allocation2 + $0xb1] sm:$0xff] %v238_v29  ;;  %274 = vst [vmem:[#allocation2 + $0xd9] sm:$0xff] %v241_v30  ;;  %v579_v0 = vld [vmem:[#allocation2 + $0x32] ss:$2 sm:$0xff]  ;;  %v348_v10 = vmul.f32 %v861_v38, %v330_v5  ;;  %v526_v15 = vmul.f32 %v891_v61, %v507_v60  ;;  %v545_v18 = vld [vmem:[#allocation2 + $0x61] ss:$2 sm:$0xff]  ;;  %v426_v28 = vadd.f32 %v418_v3, %v391_v14 }
  0x2b   : > { %275 = vst [vmem:[#allocation2 + $0xe1] sm:$0xff] %v242_v31  ;;  %278 = vst [vmem:[#allocation2 + $0x109] sm:$0xff] %v245_v35  ;;  %v294_v1 = vld [vmem:[#allocation2 + $0x30] ss:$2 sm:$0xff]  ;;  %v509_v13 = vld [vmem:[#allocation2 + $0x60] ss:$2 sm:$0xff]  ;;  %v904_v17 = vmul.f32 %v879_v49, %v579_v0 }
  0x2c   : > { %279 = vst [vmem:[#allocation2 + $0x111] sm:$0xff] %v246_v36  ;;  %282 = vst [vmem:[#allocation2 + $0x139] sm:$0xff] %v249_v37  ;;  %v312_v4 = vmul.f32 %v853_v32, %v294_v1  ;;  %v366_v6 = vld [vmem:[#allocation2 + $0x32] ss:$2 sm:$0xff]  ;;  %v581_v19 = vld [vmem:[#allocation2 + $0x62] ss:$2 sm:$0xff]  ;;  %v527_v35 = vmul.f32 %v891_v61, %v509_v13  ;;  %v563_v36 = vmul.f32 %v894_v62, %v545_v18 }
  0x2d   : > { %283 = vst [vmem:[#allocation2 + $0x141] sm:$0xff] %v250_v42  ;;  %286 = vst [vmem:[#allocation2 + $0x169] sm:$0xff] %v253_v43  ;;  %v296_v20 = vld [vmem:[#allocation2 + $0x60] ss:$2 sm:$0xff]  ;;  %v384_v22 = vmul.f32 %v864_v39, %v366_v6  ;;  %v332_v25 = vld [vmem:[#allocation2 + $0x61] ss:$2 sm:$0xff]  ;;  %v915_v37 = vmul.f32 %v879_v49, %v581_v19  ;;  %v462_v43 = vadd.f32 %v454_v8, %v426_v28 }
  0x2e   : > { %287 = vst [vmem:[#allocation2 + $0x171] sm:$0xff] %v254_v44  ;;  %288 = vst [vmem:[#allocation2 + $0x181] sm:$0xff] %v255_v45  ;;  %v356_v21 = vadd.f32 %v348_v10, %v312_v4  ;;  %v313_v24 = vmul.f32 %v853_v32, %v296_v20  ;;  %v368_v26 = vld [vmem:[#allocation2 + $0x62] ss:$2 sm:$0xff]  ;;  %v349_v31 = vmul.f32 %v861_v38, %v332_v25  ;;  %v334_v47 = vld [vmem:[#allocation2 + $0x91] ss:$2 sm:$0xff] }
  0x2f   : > { %289 = vst [vmem:[#allocation2 + $0x189] sm:$0xff] %v256_v46  ;;  %v401_v7 = vld [vmem:[#allocation2 + $0x48] ss:$2 sm:$0xff]  ;;  %v437_v11 = vld [vmem:[#allocation2 + $0x49] ss:$2 sm:$0xff]  ;;  %v385_v45 = vmul.f32 %v864_v39, %v368_v26  ;;  %v350_v59 = vmul.f32 %v861_v38, %v334_v47  ;;  %v498_v60 = vadd.f32 %v490_v9, %v462_v43 }
  0x30   : > { %v473_v12 = vld [vmem:[#allocation2 + $0x4a] ss:$2 sm:$0xff]  ;;  %v419_v23 = vmul.f32 %v874_v48, %v401_v7  ;;  %v455_v29 = vmul.f32 %v883_v54, %v437_v11  ;;  %v439_v33 = vld [vmem:[#allocation2 + $0x79] ss:$2 sm:$0xff]  ;;  %v392_v34 = vadd.f32 %v384_v22, %v356_v21  ;;  %v475_v40 = vld [vmem:[#allocation2 + $0x7a] ss:$2 sm:$0xff]  ;;  %v357_v44 = vadd.f32 %v349_v31, %v313_v24 }
  0x31   : > { %v403_v27 = vld [vmem:[#allocation2 + $0x78] ss:$2 sm:$0xff]  ;;  %v491_v30 = vmul.f32 %v886_v55, %v473_v12  ;;  %v405_v51 = vld [vmem:[#allocation2 + $0xa8] ss:$2 sm:$0xff]  ;;  %v456_v53 = vmul.f32 %v883_v54, %v439_v33  ;;  %v547_v56 = vld [vmem:[#allocation2 + $0x91] ss:$2 sm:$0xff]  ;;  %v492_v0 = vmul.f32 %v886_v55, %v475_v40  ;;  %v534_v11 = vadd.f32 %v526_v15, %v498_v60 }
  0x32   : > { %v511_v41 = vld [vmem:[#allocation2 + $0x90] ss:$2 sm:$0xff]  ;;  %v420_v46 = vmul.f32 %v874_v48, %v403_v27  ;;  %v427_v52 = vadd.f32 %v419_v23, %v392_v34  ;;  %v393_v63 = vadd.f32 %v385_v45, %v357_v44  ;;  %v300_v2 = vld [vmem:[#allocation2 + $0xc0] ss:$2 sm:$0xff]  ;;  %v421_v6 = vmul.f32 %v874_v48, %v405_v51  ;;  %v441_v7 = vld [vmem:[#allocation2 + $0xa9] ss:$2 sm:$0xff] }
  0x33   : > { %v298_v42 = vld [vmem:[#allocation2 + $0x90] ss:$2 sm:$0xff]  ;;  %v528_v1 = vmul.f32 %v891_v61, %v511_v41  ;;  %v336_v8 = vld [vmem:[#allocation2 + $0xc1] ss:$2 sm:$0xff]  ;;  %v564_v9 = vmul.f32 %v894_v62, %v547_v56  ;;  %v513_v21 = vld [vmem:[#allocation2 + $0xc0] ss:$2 sm:$0xff]  ;;  %v315_v22 = vmul.f32 %v853_v32, %v300_v2  ;;  %v570_v24 = vadd.f32 %v562_v16, %v534_v11 }
  0x34   : > { %v370_v50 = vld [vmem:[#allocation2 + $0x92] ss:$2 sm:$0xff]  ;;  %v314_v58 = vmul.f32 %v853_v32, %v298_v42  ;;  %v463_v3 = vadd.f32 %v455_v29, %v427_v52  ;;  %v372_v10 = vld [vmem:[#allocation2 + $0xc2] ss:$2 sm:$0xff]  ;;  %v428_v12 = vadd.f32 %v420_v46, %v393_v63  ;;  %v351_v23 = vmul.f32 %v861_v38, %v336_v8  ;;  %v549_v15 = vld [vmem:[#allocation2 + $0xc1] ss:$2 sm:$0xff] }
  0x35   : > { %v583_v57 = vld [vmem:[#allocation2 + $0x92] ss:$2 sm:$0xff]  ;;  %v386_v5 = vmul.f32 %v864_v39, %v370_v50  ;;  %v457_v26 = vmul.f32 %v883_v54, %v441_v7  ;;  %v387_v27 = vmul.f32 %v864_v39, %v372_v10  ;;  %v443_v34 = vld [vmem:[#allocation2 + $0xd9] ss:$2 sm:$0xff]  ;;  %v606_v16 = vadd.f32 %v904_v17, %v570_v24  ;;  %v585_v60 = vld [vmem:[#allocation2 + $0xc2] ss:$2 sm:$0xff] }
  0x36   : > { %v358_v4 = vadd.f32 %v350_v59, %v314_v58  ;;  %v600_v13 = vmul.f32 %v879_v49, %v583_v57  ;;  %v407_v14 = vld [vmem:[#allocation2 + $0xd8] ss:$2 sm:$0xff]  ;;  %v499_v18 = vadd.f32 %v491_v30, %v463_v3  ;;  %v464_v25 = vadd.f32 %v456_v53, %v428_v12  ;;  %v338_v44 = vld [vmem:[#allocation2 + $0xf1] ss:$2 sm:$0xff]  ;;  %v409_v17 = vld [vmem:[#allocation2 + $0x108] ss:$2 sm:$0xff] }
  0x37   : > { %v477_v20 = vld [vmem:[#allocation2 + $0xaa] ss:$2 sm:$0xff]  ;;  %v936_v28 = vld [vmem:[%s1003_s2] ss:$0 sm:$0xff]  ;;  %v359_v31 = vadd.f32 %v351_v23, %v315_v22  ;;  %v422_v33 = vmul.f32 %v874_v48, %v407_v14  ;;  %v529_v43 = vmul.f32 %v891_v61, %v513_v21  ;;  %v565_v46 = vmul.f32 %v894_v62, %v549_v15  ;;  %v340_v11 = vld [vmem:[#allocation2 + $0x121] ss:$2 sm:$0xff] }
  0x38   : > { %v394_v19 = vadd.f32 %v386_v5, %v358_v4  ;;  %v535_v29 = vadd.f32 %v527_v35, %v499_v18  ;;  %v302_v40 = vld [vmem:[#allocation2 + $0xf0] ss:$2 sm:$0xff]  ;;  %v500_v41 = vadd.f32 %v492_v0, %v464_v25  ;;  %v493_v42 = vmul.f32 %v886_v55, %v477_v20  ;;  %v304_v10 = vld [vmem:[#allocation2 + $0x120] ss:$2 sm:$0xff]  ;;  %v445_v18 = vld [vmem:[#allocation2 + $0x109] ss:$2 sm:$0xff] }
  0x39   : > { %v395_v47 = vadd.f32 %v387_v27, %v359_v31  ;;  %v479_v50 = vld [vmem:[#allocation2 + $0xda] ss:$2 sm:$0xff]  ;;  %v621_v52 = vadd.f32 %v936_v28, %v606_v16  ;;  %v458_v56 = vmul.f32 %v883_v54, %v443_v34  ;;  %v316_v57 = vmul.f32 %v853_v32, %v302_v40  ;;  %v481_v15 = vld [vmem:[#allocation2 + $0x10a] ss:$2 sm:$0xff]  ;;  %v342_v40 = vld [vmem:[#allocation2 + $0x151] ss:$2 sm:$0xff] }
  0x3a   : > { %v429_v30 = vadd.f32 %v421_v6, %v394_v19  ;;  %v571_v35 = vadd.f32 %v563_v36, %v535_v29  ;;  %v374_v51 = vld [vmem:[#allocation2 + $0xf2] ss:$2 sm:$0xff]  ;;  %v536_v53 = vadd.f32 %v528_v1, %v500_v41  ;;  %v352_v63 = vmul.f32 %v861_v38, %v338_v44  ;;  %v376_v23 = vld [vmem:[#allocation2 + $0x122] ss:$2 sm:$0xff] }
  0x3b   : > { %v430_v36 = vadd.f32 %v422_v33, %v395_v47  ;;  %629 = vst [vmem:[%s945_s28] sm:$0xff] %v621_v52  ;;  %v494_v2 = vmul.f32 %v886_v55, %v479_v50  ;;  %v515_v3 = vld [vmem:[#allocation2 + $0xf0] ss:$2 sm:$0xff]  ;;  %v388_v4 = vmul.f32 %v864_v39, %v374_v51  ;;  %v423_v1 = vmul.f32 %v874_v48, %v409_v17  ;;  %v517_v41 = vld [vmem:[#allocation2 + $0x120] ss:$2 sm:$0xff]  ;;  %v553_v52 = vld [vmem:[#allocation2 + $0x121] ss:$2 sm:$0xff] }
  0x3c   : > { %v465_v45 = vadd.f32 %v457_v26, %v429_v30  ;;  %v607_v58 = vadd.f32 %v915_v37, %v571_v35  ;;  %v572_v0 = vadd.f32 %v564_v9, %v536_v53  ;;  %v551_v37 = vld [vmem:[#allocation2 + $0xf1] ss:$2 sm:$0xff]  ;;  %v360_v8 = vadd.f32 %v352_v63, %v316_v57  ;;  %v587_v21 = vld [vmem:[#allocation2 + $0xf2] ss:$2 sm:$0xff] }
  0x3d   : > { %v466_v7 = vadd.f32 %v458_v56, %v430_v36  ;;  %v601_v14 = vmul.f32 %v879_v49, %v585_v60  ;;  %v530_v20 = vmul.f32 %v891_v61, %v515_v3  ;;  %v411_v24 = vld [vmem:[#allocation2 + $0x138] ss:$2 sm:$0xff]  ;;  %v566_v26 = vmul.f32 %v894_v62, %v551_v37  ;;  %v447_v35 = vld [vmem:[#allocation2 + $0x139] ss:$2 sm:$0xff]  ;;  %v413_v17 = vld [vmem:[#allocation2 + $0x168] ss:$2 sm:$0xff] }
  0x3e   : > { %v501_v59 = vadd.f32 %v493_v42, %v465_v45  ;;  %v622_v5 = vadd.f32 %v936_v28, %v607_v58  ;;  %v608_v12 = vadd.f32 %v600_v13, %v572_v0  ;;  %v396_v22 = vadd.f32 %v388_v4, %v360_v8  ;;  %v306_v34 = vld [vmem:[#allocation2 + $0x150] ss:$2 sm:$0xff] }
  0x3f   : > { %v502_v19 = vadd.f32 %v494_v2, %v466_v7  ;;  %v317_v13 = vmul.f32 %v853_v32, %v304_v10  ;;  %v353_v27 = vmul.f32 %v861_v38, %v340_v11  ;;  %v459_v33 = vmul.f32 %v883_v54, %v445_v18  ;;  %v378_v51 = vld [vmem:[#allocation2 + $0x152] ss:$2 sm:$0xff]  ;;  %v589_v0 = vld [vmem:[#allocation2 + $0x122] ss:$2 sm:$0xff]  ;;  %v449_v7 = vld [vmem:[#allocation2 + $0x169] ss:$2 sm:$0xff] }
  0x40   : > { %v537_v6 = vadd.f32 %v529_v43, %v501_v59  ;;  %630 = vst [vmem:[%s945_s28 + $0x8] sm:$0xff] %v622_v5  ;;  %v623_v25 = vadd.f32 %v936_v28, %v608_v12  ;;  %v431_v31 = vadd.f32 %v423_v1, %v396_v22  ;;  %v602_v16 = vmul.f32 %v879_v49, %v587_v21  ;;  %v483_v63 = vld [vmem:[#allocation2 + $0x13a] ss:$2 sm:$0xff]  ;;  %v555_v10 = vld [vmem:[#allocation2 + $0x151] ss:$2 sm:$0xff] }
  0x41   : > { %v538_v30 = vadd.f32 %v530_v20, %v502_v19  ;;  %v361_v42 = vadd.f32 %v353_v27, %v317_v13  ;;  %v389_v43 = vmul.f32 %v864_v39, %v376_v23  ;;  %v424_v44 = vmul.f32 %v874_v48, %v411_v24  ;;  %v485_v18 = vld [vmem:[#allocation2 + $0x16a] ss:$2 sm:$0xff]  ;;  %v557_v27 = vld [vmem:[#allocation2 + $0x181] ss:$2 sm:$0xff] }
  0x42   : > { %v573_v9 = vadd.f32 %v565_v46, %v537_v6  ;;  %631 = vst [vmem:[%s945_s28 + $0x10] sm:$0xff] %v623_v25  ;;  %v467_v47 = vadd.f32 %v459_v33, %v431_v31  ;;  %v495_v50 = vmul.f32 %v886_v55, %v481_v15  ;;  %v318_v56 = vmul.f32 %v853_v32, %v306_v34  ;;  %v519_v6 = vld [vmem:[#allocation2 + $0x150] ss:$2 sm:$0xff] }
  0x43   : > { %v574_v46 = vadd.f32 %v566_v26, %v538_v30  ;;  %v397_v53 = vadd.f32 %v389_v43, %v361_v42  ;;  %v354_v57 = vmul.f32 %v861_v38, %v342_v40  ;;  %v531_v60 = vmul.f32 %v891_v61, %v517_v41  ;;  %v591_v23 = vld [vmem:[#allocation2 + $0x152] ss:$2 sm:$0xff] }
  0x44   : > { %v609_v29 = vadd.f32 %v601_v14, %v573_v9  ;;  %v503_v59 = vadd.f32 %v495_v50, %v467_v47  ;;  %v460_v36 = vmul.f32 %v883_v54, %v447_v35  ;;  %v390_v4 = vmul.f32 %v864_v39, %v378_v51  ;;  %v521_v39 = vld [vmem:[#allocation2 + $0x180] ss:$2 sm:$0xff] }
  0x45   : > { %v610_v58 = vadd.f32 %v602_v16, %v574_v46  ;;  %v432_v2 = vadd.f32 %v424_v44, %v397_v53  ;;  %v362_v3 = vadd.f32 %v354_v57, %v318_v56  ;;  %v425_v1 = vmul.f32 %v874_v48, %v413_v17 }
  0x46   : > { %v624_v45 = vadd.f32 %v936_v28, %v609_v29  ;;  %v539_v5 = vadd.f32 %v531_v60, %v503_v59  ;;  %v567_v38 = vmul.f32 %v894_v62, %v553_v52  ;;  %v496_v8 = vmul.f32 %v886_v55, %v483_v63 }
  0x47   : > { %v625_v32 = vadd.f32 %v936_v28, %v610_v58  ;;  %v468_v37 = vadd.f32 %v460_v36, %v432_v2  ;;  %v398_v11 = vadd.f32 %v390_v4, %v362_v3  ;;  %v603_v14 = vmul.f32 %v879_v49, %v589_v0 }
  0x48   : > { %632 = vst [vmem:[%s945_s28 + $0x18] sm:$0xff] %v624_v45  ;;  %v575_v12 = vadd.f32 %v567_v38, %v539_v5  ;;  %v532_v48 = vmul.f32 %v891_v61, %v519_v6  ;;  %v461_v20 = vmul.f32 %v883_v54, %v449_v7  ;;  %v568_v22 = vmul.f32 %v894_v62, %v555_v10  ;;  %v593_v54 = vld [vmem:[#allocation2 + $0x182] ss:$2 sm:$0xff] }
  0x49   : > { %633 = vst [vmem:[%s945_s28 + $0x20] sm:$0xff] %v625_v32  ;;  %v504_v9 = vadd.f32 %v496_v8, %v468_v37  ;;  %v433_v19 = vadd.f32 %v425_v1, %v398_v11  ;;  %v497_v26 = vmul.f32 %v886_v55, %v485_v18  ;;  %v533_v15 = vmul.f32 %v891_v61, %v521_v39 }
  0x4a   : > { %v611_v21 = vadd.f32 %v603_v14, %v575_v12  ;;  %v604_v30 = vmul.f32 %v879_v49, %v591_v23  ;;  %v569_v40 = vmul.f32 %v894_v62, %v557_v27  ;;  %v605_v55 = vmul.f32 %v879_v49, %v593_v54 }
  0x4b   : > { %v540_v24 = vadd.f32 %v532_v48, %v504_v9  ;;  %v469_v25 = vadd.f32 %v461_v20, %v433_v19 }
  0x4c   : > { %v626_v13 = vadd.f32 %v936_v28, %v611_v21 }
  0x4d   : > { %v576_v29 = vadd.f32 %v568_v22, %v540_v24  ;;  %v505_v31 = vadd.f32 %v497_v26, %v469_v25 }
  0x4e   : > { %634 = vst [vmem:[%s945_s28 + $0x28] sm:$0xff] %v626_v13 }
  0x4f   : > { %v612_v33 = vadd.f32 %v604_v30, %v576_v29  ;;  %v541_v34 = vadd.f32 %v533_v15, %v505_v31 }
  0x51   : > { %v627_v16 = vadd.f32 %v936_v28, %v612_v33  ;;  %v577_v41 = vadd.f32 %v569_v40, %v541_v34 }
  0x53   : > { %635 = vst [vmem:[%s945_s28 + $0x30] sm:$0xff] %v627_v16  ;;  %v613_v61 = vadd.f32 %v605_v55, %v577_v41 }
  0x55   : > { %v628_v42 = vadd.f32 %v936_v28, %v613_v61 }
  0x57   : > { %636 = vst [vmem:[%s945_s28 + $0x38] sm:$0xff] %v628_v42 }
  0x58 PF: > { %s13_s12 = sadd.s32 1, %s768_s12  }
  0x59   : > { %p10_p4 = scmp.ge.s32.totalorder %s13_s12, 4  }
  0x5b   :  { %12 = sbr.rel (!%p10_p4) target bundleno = 1 (0x1), region = 133 }

</bundles_post_ra>
